<compile_context>
chip_gen: v7x
topology: tpu7x:2x2x1
jax: 0.10.0
libtpu: 0.0.40
codegen_flags: <defaults>
</compile_context>

<pallas_src>
import jax
import jax.numpy as jnp
from jax import lax
from jax.experimental import pallas as pl
from jax.experimental.pallas import tpu as pltpu

# ----- small, module-consistent config (real BERT: H=768, 12 layers, 12 heads) -----
BATCH      = 2
SEQ        = 8
HIDDEN     = 32
NUM_HEADS  = 2
HEAD_DIM   = HIDDEN // NUM_HEADS
FFN        = 64
NUM_LAYERS = 2
VOCAB      = 100
NUM_LABELS = 2
NLP        = 128            # lane-padded logits width (>= NUM_LABELS) for a dense store
LN_EPS     = 1e-12
BS         = BATCH * SEQ


def _layer_norm(x, g, b, eps=LN_EPS):
    mu = jnp.mean(x, axis=-1, keepdims=True)
    var = jnp.mean(jnp.square(x - mu), axis=-1, keepdims=True)
    return (x - mu) * lax.rsqrt(var + eps) * g + b


# ------------------------------------------------------------------
# Single fused kernel: all encoder layers + CWE->CAPEC head.
# ------------------------------------------------------------------
def fused_bert_kernel(x_ref, amask_ref, wqkv_ref, bqkv_ref, wo_ref,
                      w1_ref, b1_ref, w2_ref, hvec_ref, pool_ref,
                      whead_ref, bc_ref, o_ref):
    x = x_ref[...]                        # (B*S, H) f32
    amask = amask_ref[...]                # (B*S, B*S) additive mask (0 / -1e9)
    scale = 1.0 / (HEAD_DIM ** 0.5)

    for l in range(NUM_LAYERS):           # static unroll; all weights stay VMEM-resident
        # ---- multi-head self-attention: one packed QKV matmul, lane-sliced per head ----
        qkv = jnp.dot(x, wqkv_ref[l],
                      preferred_element_type=jnp.float32) + bqkv_ref[l]     # (BS, 3H)

        ctx_heads = []
        for h in range(NUM_HEADS):        # static; slices are cheap lane selects
            q_h = qkv[:, h * HEAD_DIM:(h + 1) * HEAD_DIM]
            k_h = qkv[:, HIDDEN + h * HEAD_DIM:HIDDEN + (h + 1) * HEAD_DIM]
            v_h = qkv[:, 2 * HIDDEN + h * HEAD_DIM:2 * HIDDEN + (h + 1) * HEAD_DIM]

            s = lax.dot_general(q_h, k_h, (((1,), (1,)), ((), ())),
                                preferred_element_type=jnp.float32) * scale  # (BS, BS)
            s = s + amask                  # blocks cross-batch pairs + padded keys
            s = s - jnp.max(s, axis=-1, keepdims=True)
            p = jnp.exp(s)
            p = p * pl.reciprocal(jnp.sum(p, axis=-1, keepdims=True), approx=True)
            ctx_heads.append(jnp.dot(p, v_h,
                                     preferred_element_type=jnp.float32))    # (BS, HD)

        ctx = jnp.concatenate(ctx_heads, axis=-1)                            # (BS, H)

        hv = hvec_ref[l]                  # (6, H): [bo, ln1_g, ln1_b, b2, ln2_g, ln2_b]
        attn = jnp.dot(ctx, wo_ref[l], preferred_element_type=jnp.float32) + hv[0:1, :]
        h1 = _layer_norm(x + attn, hv[1:2, :], hv[2:3, :])

        # ---- feed-forward ----
        inter = jax.nn.gelu(
            jnp.dot(h1, w1_ref[l], preferred_element_type=jnp.float32) + b1_ref[l],
            approximate=True)  # TODO(synk): real BERT uses erf-GELU; tanh approx for EUP lowering
        ffn = jnp.dot(inter, w2_ref[l], preferred_element_type=jnp.float32) + hv[3:4, :]
        x = _layer_norm(h1 + ffn, hv[4:5, :], hv[5:6, :])

    # ---- InferenceModelCWEtoCAPEC head (Dropout(0.1) is identity at inference) ----
    # pool_ref: first BATCH rows one-hot select the CLS token, last BATCH rows are 1/SEQ
    # mean-pool weights -> one (2B,BS)x(BS,H) matmul, no 3-D reshape / sublane reduce.
    pooled = jnp.dot(pool_ref[...], x, preferred_element_type=jnp.float32)   # (2B, H)
    cls = pooled[:BATCH, :]
    avg = pooled[BATCH:, :]               # mean over ALL tokens == torch.mean(dim=1)
    feats = jnp.concatenate([jnp.abs(cls - avg), cls * avg], axis=-1)        # (B, 2H)
    logits = jnp.dot(feats, whead_ref[...],
                     preferred_element_type=jnp.float32) + bc_ref[...]       # (B, NLP)
    o_ref[...] = logits                   # lane-dense store; sliced in wrapper


# ------------------------------------------------------------------
# Deterministic synthetic parameters (stand-in for the BERT checkpoint)
# ------------------------------------------------------------------
def init_params(key):
    H, F = HIDDEN, FFN
    n_keys = 6 + NUM_LAYERS * 6 + 1
    keys = list(jax.random.split(key, n_keys))
    nk = iter(keys)

    def w(shape, scale=0.02):
        return (scale * jax.random.normal(next(nk), shape)).astype(jnp.float32)

    params = {
        "word_emb": w((VOCAB, H)),
        "pos_emb":  w((SEQ, H)),
        "type_emb": w((2, H)),
        "emb_ln_g": jnp.ones((1, H), jnp.float32),
        "emb_ln_b": jnp.zeros((1, H), jnp.float32),
        "layers": [],
    }
    _ = next(nk); _ = next(nk); _ = next(nk)  # keep key consumption deterministic & simple
    for _l in range(NUM_LAYERS):
        layer = {
            "wq": w((H, H)), "bq": jnp.zeros((1, H), jnp.float32),
            "wk": w((H, H)), "bk": jnp.zeros((1, H), jnp.float32),
            "wv": w((H, H)), "bv": jnp.zeros((1, H), jnp.float32),
            "wo": w((H, H)), "bo": jnp.zeros((1, H), jnp.float32),
            "ln1_g": jnp.ones((1, H), jnp.float32), "ln1_b": jnp.zeros((1, H), jnp.float32),
            "w1": w((H, F)), "b1": jnp.zeros((1, F), jnp.float32),
            "w2": w((F, H)), "b2": jnp.zeros((1, H), jnp.float32),
            "ln2_g": jnp.ones((1, H), jnp.float32), "ln2_b": jnp.zeros((1, H), jnp.float32),
        }
        params["layers"].append(layer)
    params["w_cls"] = w((NUM_LABELS, 2 * H))
    params["b_cls"] = jnp.zeros((NUM_LABELS,), jnp.float32)
    return params


# ------------------------------------------------------------------
# Pack the checkpoint into the kernel's stacked / fused layout (free glue).
# ------------------------------------------------------------------
def pack_params(params):
    H = HIDDEN
    wqkv, bqkv, wo, w1, b1, w2, hvec = [], [], [], [], [], [], []
    for lp in params["layers"]:
        wqkv.append(jnp.concatenate([lp["wq"], lp["wk"], lp["wv"]], axis=-1))   # (H, 3H)
        bqkv.append(jnp.concatenate([lp["bq"], lp["bk"], lp["bv"]], axis=-1))   # (1, 3H)
        wo.append(lp["wo"])                                                     # (H, H)
        w1.append(lp["w1"])
        b1.append(lp["b1"])
        w2.append(lp["w2"])
        hvec.append(jnp.concatenate(
            [lp["bo"], lp["ln1_g"], lp["ln1_b"], lp["b2"], lp["ln2_g"], lp["ln2_b"]],
            axis=0))                                                            # (6, H)
    packed = {
        "wqkv": jnp.stack(wqkv),   # (L, H, 3H)
        "bqkv": jnp.stack(bqkv),   # (L, 1, 3H)
        "wo":   jnp.stack(wo),     # (L, H, H)
        "w1":   jnp.stack(w1),     # (L, H, F)
        "b1":   jnp.stack(b1),     # (L, 1, F)
        "w2":   jnp.stack(w2),     # (L, F, H)
        "hvec": jnp.stack(hvec),   # (L, 6, H)
    }
    # classifier: logits = [diff, mul] @ W.T + b, W is (NL, 2H).  One fused (2H, NLP)
    # matrix, zero-padded along the label axis to 128 lanes for a dense store.
    w_cls, b_cls = params["w_cls"], params["b_cls"]
    packed["whead"] = jnp.zeros((2 * H, NLP), jnp.float32).at[:, :NUM_LABELS].set(w_cls.T)
    packed["bc"] = jnp.zeros((1, NLP), jnp.float32).at[0, :NUM_LABELS].set(b_cls)
    # cls-select (one-hot) rows stacked on top of mean-pool (1/SEQ) rows: (2B, BS)
    sel = jnp.zeros((BATCH, BS), jnp.float32)
    pool = jnp.zeros((BATCH, BS), jnp.float32)
    for b in range(BATCH):
        sel = sel.at[b, b * SEQ].set(1.0)
        pool = pool.at[b, b * SEQ:(b + 1) * SEQ].set(1.0 / SEQ)
    packed["pool"] = jnp.concatenate([sel, pool], axis=0)                       # (2B, BS)
    return packed


def _forward_impl(params, packed, input_ids, attention_mask):
    # ---- embeddings (glue: gather + layer norm), fused into the jit ----
    x = (params["word_emb"][input_ids]
         + params["pos_emb"][None, :, :]
         + params["type_emb"][0][None, None, :])
    x = _layer_norm(x, params["emb_ln_g"], params["emb_ln_b"])
    x = x.reshape(BS, HIDDEN).astype(jnp.float32)          # batch folded into rows

    # additive mask over the batch-folded (B*S, B*S) score matrix:
    # -1e9 for cross-batch pairs and for padded keys, 0 otherwise.
    bid = jnp.arange(BS, dtype=jnp.int32) // SEQ
    same_batch = bid[:, None] == bid[None, :]
    key_valid = (attention_mask.reshape(BS) > 0.5)[None, :]
    amask = jnp.where(same_batch & key_valid, 0.0, -1e9).astype(jnp.float32)

    def _rep(a):  # whole-array block, single grid step
        n = a.ndim
        return pl.BlockSpec(a.shape, lambda i, _n=n: (0,) * _n)

    args = (x, amask, packed["wqkv"], packed["bqkv"], packed["wo"],
            packed["w1"], packed["b1"], packed["w2"], packed["hvec"],
            packed["pool"], packed["whead"], packed["bc"])

    logits_pad = pl.pallas_call(
        fused_bert_kernel,
        out_shape=jax.ShapeDtypeStruct((BATCH, NLP), jnp.float32),
        grid=(1,),
        in_specs=[_rep(a) for a in args],
        out_specs=pl.BlockSpec((BATCH, NLP), lambda i: (0, 0)),
        compiler_params=pltpu.CompilerParams(dimension_semantics=("arbitrary",)),
    )(*args)
    return logits_pad[:, :NUM_LABELS]


# jit the whole wrapper: at these shapes the un-jitted glue (gather, LN, where,
# reshape, slice) would dominate wall clock via per-op dispatch.
forward = jax.jit(_forward_impl)


if __name__ == "__main__":
    key = jax.random.PRNGKey(0)
    pkey, idkey = jax.random.split(key)
    params = init_params(pkey)
    packed = pack_params(params)

    input_ids = jax.random.randint(idkey, (BATCH, SEQ), 0, VOCAB, dtype=jnp.int32)
    attention_mask = jnp.ones((BATCH, SEQ), jnp.float32).at[1, 6:].set(0.0)

    logits = forward(params, packed, input_ids, attention_mask)
    jax.block_until_ready(logits)
    assert logits.shape == (BATCH, NUM_LABELS) and logits.dtype == jnp.float32
    print("KERNEL_OK")
</pallas_src>

<mosaic_0001>
module attributes {stable_mosaic.version = 11 : i64} {
  func.func @fused_bert_kernel(%arg0: i32, %arg1: memref<16x32xf32, #tpu.memory_space<vmem>>, %arg2: memref<16x16xf32, #tpu.memory_space<vmem>>, %arg3: memref<2x32x96xf32, #tpu.memory_space<vmem>>, %arg4: memref<2x1x96xf32, #tpu.memory_space<vmem>>, %arg5: memref<2x32x32xf32, #tpu.memory_space<vmem>>, %arg6: memref<2x32x64xf32, #tpu.memory_space<vmem>>, %arg7: memref<2x1x64xf32, #tpu.memory_space<vmem>>, %arg8: memref<2x64x32xf32, #tpu.memory_space<vmem>>, %arg9: memref<2x6x32xf32, #tpu.memory_space<vmem>>, %arg10: memref<4x16xf32, #tpu.memory_space<vmem>>, %arg11: memref<64x128xf32, #tpu.memory_space<vmem>>, %arg12: memref<1x128xf32, #tpu.memory_space<vmem>>, %arg13: memref<2x128xf32, #tpu.memory_space<vmem>>) attributes {dimension_semantics = [#tpu.dimension_semantics<arbitrary>], iteration_bounds = array<i64: 1>, scalar_prefetch = 0 : i64, scratch_operands = 0 : i64, tpu.core_type = #tpu.core_type<tc>, window_params = [{pipeline_mode = #tpu.pipeline_mode<synchronous>, transform_indices = @transform_0, window_bounds = array<i64: 16, 32>}, {pipeline_mode = #tpu.pipeline_mode<synchronous>, transform_indices = @transform_1, window_bounds = array<i64: 16, 16>}, {pipeline_mode = #tpu.pipeline_mode<synchronous>, transform_indices = @transform_2, window_bounds = array<i64: 2, 32, 96>}, {pipeline_mode = #tpu.pipeline_mode<synchronous>, transform_indices = @transform_3, window_bounds = array<i64: 2, 1, 96>}, {pipeline_mode = #tpu.pipeline_mode<synchronous>, transform_indices = @transform_4, window_bounds = array<i64: 2, 32, 32>}, {pipeline_mode = #tpu.pipeline_mode<synchronous>, transform_indices = @transform_5, window_bounds = array<i64: 2, 32, 64>}, {pipeline_mode = #tpu.pipeline_mode<synchronous>, transform_indices = @transform_6, window_bounds = array<i64: 2, 1, 64>}, {pipeline_mode = #tpu.pipeline_mode<synchronous>, transform_indices = @transform_7, window_bounds = array<i64: 2, 64, 32>}, {pipeline_mode = #tpu.pipeline_mode<synchronous>, transform_indices = @transform_8, window_bounds = array<i64: 2, 6, 32>}, {pipeline_mode = #tpu.pipeline_mode<synchronous>, transform_indices = @transform_9, window_bounds = array<i64: 4, 16>}, {pipeline_mode = #tpu.pipeline_mode<synchronous>, transform_indices = @transform_10, window_bounds = array<i64: 64, 128>}, {pipeline_mode = #tpu.pipeline_mode<synchronous>, transform_indices = @transform_11, window_bounds = array<i64: 1, 128>}, {pipeline_mode = #tpu.pipeline_mode<synchronous>, transform_indices = @transform_12, window_bounds = array<i64: 2, 128>}]} {
    %c0 = arith.constant 0 : index
    %c0_0 = arith.constant 0 : index
    %0 = vector.load %arg1[%c0, %c0_0] : memref<16x32xf32, #tpu.memory_space<vmem>>, vector<16x32xf32>
    %c0_1 = arith.constant 0 : index
    %c0_2 = arith.constant 0 : index
    %1 = vector.load %arg2[%c0_1, %c0_2] : memref<16x16xf32, #tpu.memory_space<vmem>>, vector<16x16xf32>
    %c0_3 = arith.constant 0 : index
    %c0_4 = arith.constant 0 : index
    %c0_5 = arith.constant 0 : index
    %2 = vector.load %arg3[%c0_3, %c0_4, %c0_5] : memref<2x32x96xf32, #tpu.memory_space<vmem>>, vector<1x32x96xf32>
    %3 = vector.shape_cast %2 : vector<1x32x96xf32> to vector<32x96xf32>
    %cst = arith.constant dense<0.000000e+00> : vector<16x96xf32>
    %4 = tpu.matmul %0, %3, %cst {dimension_numbers = #tpu.dot_dimension_numbers<[1], [0], [0], [1], [0, 0, 1, 1], [], []>} : vector<16x32xf32>, vector<32x96xf32>, vector<16x96xf32> -> vector<16x96xf32>
    %c0_6 = arith.constant 0 : index
    %c0_7 = arith.constant 0 : index
    %c0_8 = arith.constant 0 : index
    %5 = vector.load %arg4[%c0_6, %c0_7, %c0_8] : memref<2x1x96xf32, #tpu.memory_space<vmem>>, vector<1x1x96xf32>
    %6 = vector.shape_cast %5 : vector<1x1x96xf32> to vector<1x96xf32>
    %7 = vector.broadcast %6 : vector<1x96xf32> to vector<16x96xf32>
    %8 = arith.addf %4, %7 : vector<16x96xf32>
    %9 = vector.extract_strided_slice %8 {offsets = [0, 0], sizes = [16, 16], strides = [1, 1]} : vector<16x96xf32> to vector<16x16xf32>
    %10 = vector.extract_strided_slice %8 {offsets = [0, 32], sizes = [16, 16], strides = [1, 1]} : vector<16x96xf32> to vector<16x16xf32>
    %11 = vector.extract_strided_slice %8 {offsets = [0, 64], sizes = [16, 16], strides = [1, 1]} : vector<16x96xf32> to vector<16x16xf32>
    %cst_9 = arith.constant dense<0.000000e+00> : vector<16x16xf32>
    %12 = tpu.matmul %9, %10, %cst_9 {dimension_numbers = #tpu.dot_dimension_numbers<[1], [1], [0], [0], [0, 0, 1, 0], [], []>} : vector<16x16xf32>, vector<16x16xf32>, vector<16x16xf32> -> vector<16x16xf32>
    %cst_10 = arith.constant 2.500000e-01 : f32
    %13 = vector.broadcast %cst_10 : f32 to vector<16x16xf32>
    %14 = arith.mulf %12, %13 : vector<16x16xf32>
    %15 = arith.addf %14, %1 : vector<16x16xf32>
    %cst_11 = arith.constant dense<0xFF800000> : vector<16xf32>
    %16 = vector.multi_reduction <maximumf>, %15, %cst_11 [1] : vector<16x16xf32> to vector<16xf32>
    %17 = vector.shape_cast %16 : vector<16xf32> to vector<16x1xf32>
    %18 = vector.broadcast %17 : vector<16x1xf32> to vector<16x16xf32>
    %19 = arith.subf %15, %18 : vector<16x16xf32>
    %20 = math.exp %19 : vector<16x16xf32>
    %cst_12 = arith.constant dense<0.000000e+00> : vector<16xf32>
    %21 = vector.multi_reduction <add>, %20, %cst_12 [1] : vector<16x16xf32> to vector<16xf32>
    %22 = vector.shape_cast %21 : vector<16xf32> to vector<16x1xf32>
    %23 = tpu.reciprocal %22 {approx = true} : vector<16x1xf32> -> vector<16x1xf32>
    %24 = vector.broadcast %23 : vector<16x1xf32> to vector<16x16xf32>
    %25 = arith.mulf %20, %24 : vector<16x16xf32>
    %cst_13 = arith.constant dense<0.000000e+00> : vector<16x16xf32>
    %26 = tpu.matmul %25, %11, %cst_13 {dimension_numbers = #tpu.dot_dimension_numbers<[1], [0], [0], [1], [0, 0, 1, 1], [], []>} : vector<16x16xf32>, vector<16x16xf32>, vector<16x16xf32> -> vector<16x16xf32>
    %27 = vector.extract_strided_slice %8 {offsets = [0, 16], sizes = [16, 16], strides = [1, 1]} : vector<16x96xf32> to vector<16x16xf32>
    %28 = vector.extract_strided_slice %8 {offsets = [0, 48], sizes = [16, 16], strides = [1, 1]} : vector<16x96xf32> to vector<16x16xf32>
    %29 = vector.extract_strided_slice %8 {offsets = [0, 80], sizes = [16, 16], strides = [1, 1]} : vector<16x96xf32> to vector<16x16xf32>
    %cst_14 = arith.constant dense<0.000000e+00> : vector<16x16xf32>
    %30 = tpu.matmul %27, %28, %cst_14 {dimension_numbers = #tpu.dot_dimension_numbers<[1], [1], [0], [0], [0, 0, 1, 0], [], []>} : vector<16x16xf32>, vector<16x16xf32>, vector<16x16xf32> -> vector<16x16xf32>
    %cst_15 = arith.constant 2.500000e-01 : f32
    %31 = vector.broadcast %cst_15 : f32 to vector<16x16xf32>
    %32 = arith.mulf %30, %31 : vector<16x16xf32>
    %33 = arith.addf %32, %1 : vector<16x16xf32>
    %cst_16 = arith.constant dense<0xFF800000> : vector<16xf32>
    %34 = vector.multi_reduction <maximumf>, %33, %cst_16 [1] : vector<16x16xf32> to vector<16xf32>
    %35 = vector.shape_cast %34 : vector<16xf32> to vector<16x1xf32>
    %36 = vector.broadcast %35 : vector<16x1xf32> to vector<16x16xf32>
    %37 = arith.subf %33, %36 : vector<16x16xf32>
    %38 = math.exp %37 : vector<16x16xf32>
    %cst_17 = arith.constant dense<0.000000e+00> : vector<16xf32>
    %39 = vector.multi_reduction <add>, %38, %cst_17 [1] : vector<16x16xf32> to vector<16xf32>
    %40 = vector.shape_cast %39 : vector<16xf32> to vector<16x1xf32>
    %41 = tpu.reciprocal %40 {approx = true} : vector<16x1xf32> -> vector<16x1xf32>
    %42 = vector.broadcast %41 : vector<16x1xf32> to vector<16x16xf32>
    %43 = arith.mulf %38, %42 : vector<16x16xf32>
    %cst_18 = arith.constant dense<0.000000e+00> : vector<16x16xf32>
    %44 = tpu.matmul %43, %29, %cst_18 {dimension_numbers = #tpu.dot_dimension_numbers<[1], [0], [0], [1], [0, 0, 1, 1], [], []>} : vector<16x16xf32>, vector<16x16xf32>, vector<16x16xf32> -> vector<16x16xf32>
    %45 = tpu.concatenate %26, %44 in 1 : vector<16x16xf32>, vector<16x16xf32> -> vector<16x32xf32>
    %c0_19 = arith.constant 0 : index
    %c0_20 = arith.constant 0 : index
    %c0_21 = arith.constant 0 : index
    %46 = vector.load %arg9[%c0_19, %c0_20, %c0_21] : memref<2x6x32xf32, #tpu.memory_space<vmem>>, vector<1x6x32xf32>
    %47 = vector.shape_cast %46 : vector<1x6x32xf32> to vector<6x32xf32>
    %c0_22 = arith.constant 0 : index
    %c0_23 = arith.constant 0 : index
    %c0_24 = arith.constant 0 : index
    %48 = vector.load %arg5[%c0_22, %c0_23, %c0_24] : memref<2x32x32xf32, #tpu.memory_space<vmem>>, vector<1x32x32xf32>
    %49 = vector.shape_cast %48 : vector<1x32x32xf32> to vector<32x32xf32>
    %cst_25 = arith.constant dense<0.000000e+00> : vector<16x32xf32>
    %50 = tpu.matmul %45, %49, %cst_25 {dimension_numbers = #tpu.dot_dimension_numbers<[1], [0], [0], [1], [0, 0, 1, 1], [], []>} : vector<16x32xf32>, vector<32x32xf32>, vector<16x32xf32> -> vector<16x32xf32>
    %51 = vector.extract_strided_slice %47 {offsets = [0, 0], sizes = [1, 32], strides = [1, 1]} : vector<6x32xf32> to vector<1x32xf32>
    %52 = vector.broadcast %51 : vector<1x32xf32> to vector<16x32xf32>
    %53 = arith.addf %50, %52 : vector<16x32xf32>
    %54 = arith.addf %0, %53 : vector<16x32xf32>
    %55 = vector.extract_strided_slice %47 {offsets = [1, 0], sizes = [1, 32], strides = [1, 1]} : vector<6x32xf32> to vector<1x32xf32>
    %56 = vector.extract_strided_slice %47 {offsets = [2, 0], sizes = [1, 32], strides = [1, 1]} : vector<6x32xf32> to vector<1x32xf32>
    %cst_26 = arith.constant dense<0.000000e+00> : vector<16xf32>
    %57 = vector.multi_reduction <add>, %54, %cst_26 [1] : vector<16x32xf32> to vector<16xf32>
    %58 = vector.shape_cast %57 : vector<16xf32> to vector<16x1xf32>
    %cst_27 = arith.constant 3.200000e+01 : f32
    %59 = vector.broadcast %cst_27 : f32 to vector<16x1xf32>
    %60 = arith.divf %58, %59 : vector<16x1xf32>
    %61 = vector.broadcast %60 : vector<16x1xf32> to vector<16x32xf32>
    %62 = arith.subf %54, %61 : vector<16x32xf32>
    %63 = arith.mulf %62, %62 : vector<16x32xf32>
    %cst_28 = arith.constant dense<0.000000e+00> : vector<16xf32>
    %64 = vector.multi_reduction <add>, %63, %cst_28 [1] : vector<16x32xf32> to vector<16xf32>
    %65 = vector.shape_cast %64 : vector<16xf32> to vector<16x1xf32>
    %cst_29 = arith.constant 3.200000e+01 : f32
    %66 = vector.broadcast %cst_29 : f32 to vector<16x1xf32>
    %67 = arith.divf %65, %66 : vector<16x1xf32>
    %68 = vector.broadcast %60 : vector<16x1xf32> to vector<16x32xf32>
    %69 = arith.subf %54, %68 : vector<16x32xf32>
    %cst_30 = arith.constant 9.99999996E-13 : f32
    %70 = vector.broadcast %cst_30 : f32 to vector<16x1xf32>
    %71 = arith.addf %67, %70 : vector<16x1xf32>
    %72 = math.rsqrt %71 : vector<16x1xf32>
    %73 = vector.broadcast %72 : vector<16x1xf32> to vector<16x32xf32>
    %74 = arith.mulf %69, %73 : vector<16x32xf32>
    %75 = vector.broadcast %55 : vector<1x32xf32> to vector<16x32xf32>
    %76 = arith.mulf %74, %75 : vector<16x32xf32>
    %77 = vector.broadcast %56 : vector<1x32xf32> to vector<16x32xf32>
    %78 = arith.addf %76, %77 : vector<16x32xf32>
    %c0_31 = arith.constant 0 : index
    %c0_32 = arith.constant 0 : index
    %c0_33 = arith.constant 0 : index
    %79 = vector.load %arg6[%c0_31, %c0_32, %c0_33] : memref<2x32x64xf32, #tpu.memory_space<vmem>>, vector<1x32x64xf32>
    %80 = vector.shape_cast %79 : vector<1x32x64xf32> to vector<32x64xf32>
    %cst_34 = arith.constant dense<0.000000e+00> : vector<16x64xf32>
    %81 = tpu.matmul %78, %80, %cst_34 {dimension_numbers = #tpu.dot_dimension_numbers<[1], [0], [0], [1], [0, 0, 1, 1], [], []>} : vector<16x32xf32>, vector<32x64xf32>, vector<16x64xf32> -> vector<16x64xf32>
    %c0_35 = arith.constant 0 : index
    %c0_36 = arith.constant 0 : index
    %c0_37 = arith.constant 0 : index
    %82 = vector.load %arg7[%c0_35, %c0_36, %c0_37] : memref<2x1x64xf32, #tpu.memory_space<vmem>>, vector<1x1x64xf32>
    %83 = vector.shape_cast %82 : vector<1x1x64xf32> to vector<1x64xf32>
    %84 = vector.broadcast %83 : vector<1x64xf32> to vector<16x64xf32>
    %85 = arith.addf %81, %84 : vector<16x64xf32>
    %86 = arith.mulf %85, %85 : vector<16x64xf32>
    %87 = arith.mulf %85, %86 : vector<16x64xf32>
    %cst_38 = arith.constant 4.471500e-02 : f32
    %88 = vector.broadcast %cst_38 : f32 to vector<16x64xf32>
    %89 = arith.mulf %88, %87 : vector<16x64xf32>
    %90 = arith.addf %85, %89 : vector<16x64xf32>
    %cst_39 = arith.constant 0.797884583 : f32
    %91 = vector.broadcast %cst_39 : f32 to vector<16x64xf32>
    %92 = arith.mulf %91, %90 : vector<16x64xf32>
    %93 = math.tanh %92 : vector<16x64xf32>
    %cst_40 = arith.constant 1.000000e+00 : f32
    %94 = vector.broadcast %cst_40 : f32 to vector<16x64xf32>
    %95 = arith.addf %94, %93 : vector<16x64xf32>
    %cst_41 = arith.constant 5.000000e-01 : f32
    %96 = vector.broadcast %cst_41 : f32 to vector<16x64xf32>
    %97 = arith.mulf %96, %95 : vector<16x64xf32>
    %98 = arith.mulf %85, %97 : vector<16x64xf32>
    %c0_42 = arith.constant 0 : index
    %c0_43 = arith.constant 0 : index
    %c0_44 = arith.constant 0 : index
    %99 = vector.load %arg8[%c0_42, %c0_43, %c0_44] : memref<2x64x32xf32, #tpu.memory_space<vmem>>, vector<1x64x32xf32>
    %100 = vector.shape_cast %99 : vector<1x64x32xf32> to vector<64x32xf32>
    %cst_45 = arith.constant dense<0.000000e+00> : vector<16x32xf32>
    %101 = tpu.matmul %98, %100, %cst_45 {dimension_numbers = #tpu.dot_dimension_numbers<[1], [0], [0], [1], [0, 0, 1, 1], [], []>} : vector<16x64xf32>, vector<64x32xf32>, vector<16x32xf32> -> vector<16x32xf32>
    %102 = vector.extract_strided_slice %47 {offsets = [3, 0], sizes = [1, 32], strides = [1, 1]} : vector<6x32xf32> to vector<1x32xf32>
    %103 = vector.broadcast %102 : vector<1x32xf32> to vector<16x32xf32>
    %104 = arith.addf %101, %103 : vector<16x32xf32>
    %105 = arith.addf %78, %104 : vector<16x32xf32>
    %106 = vector.extract_strided_slice %47 {offsets = [4, 0], sizes = [1, 32], strides = [1, 1]} : vector<6x32xf32> to vector<1x32xf32>
    %107 = vector.extract_strided_slice %47 {offsets = [5, 0], sizes = [1, 32], strides = [1, 1]} : vector<6x32xf32> to vector<1x32xf32>
    %cst_46 = arith.constant dense<0.000000e+00> : vector<16xf32>
    %108 = vector.multi_reduction <add>, %105, %cst_46 [1] : vector<16x32xf32> to vector<16xf32>
    %109 = vector.shape_cast %108 : vector<16xf32> to vector<16x1xf32>
    %cst_47 = arith.constant 3.200000e+01 : f32
    %110 = vector.broadcast %cst_47 : f32 to vector<16x1xf32>
    %111 = arith.divf %109, %110 : vector<16x1xf32>
    %112 = vector.broadcast %111 : vector<16x1xf32> to vector<16x32xf32>
    %113 = arith.subf %105, %112 : vector<16x32xf32>
    %114 = arith.mulf %113, %113 : vector<16x32xf32>
    %cst_48 = arith.constant dense<0.000000e+00> : vector<16xf32>
    %115 = vector.multi_reduction <add>, %114, %cst_48 [1] : vector<16x32xf32> to vector<16xf32>
    %116 = vector.shape_cast %115 : vector<16xf32> to vector<16x1xf32>
    %cst_49 = arith.constant 3.200000e+01 : f32
    %117 = vector.broadcast %cst_49 : f32 to vector<16x1xf32>
    %118 = arith.divf %116, %117 : vector<16x1xf32>
    %119 = vector.broadcast %111 : vector<16x1xf32> to vector<16x32xf32>
    %120 = arith.subf %105, %119 : vector<16x32xf32>
    %cst_50 = arith.constant 9.99999996E-13 : f32
    %121 = vector.broadcast %cst_50 : f32 to vector<16x1xf32>
    %122 = arith.addf %118, %121 : vector<16x1xf32>
    %123 = math.rsqrt %122 : vector<16x1xf32>
    %124 = vector.broadcast %123 : vector<16x1xf32> to vector<16x32xf32>
    %125 = arith.mulf %120, %124 : vector<16x32xf32>
    %126 = vector.broadcast %106 : vector<1x32xf32> to vector<16x32xf32>
    %127 = arith.mulf %125, %126 : vector<16x32xf32>
    %128 = vector.broadcast %107 : vector<1x32xf32> to vector<16x32xf32>
    %129 = arith.addf %127, %128 : vector<16x32xf32>
    %c1 = arith.constant 1 : index
    %c0_51 = arith.constant 0 : index
    %c0_52 = arith.constant 0 : index
    %130 = vector.load %arg3[%c1, %c0_51, %c0_52] : memref<2x32x96xf32, #tpu.memory_space<vmem>>, vector<1x32x96xf32>
    %131 = vector.shape_cast %130 : vector<1x32x96xf32> to vector<32x96xf32>
    %cst_53 = arith.constant dense<0.000000e+00> : vector<16x96xf32>
    %132 = tpu.matmul %129, %131, %cst_53 {dimension_numbers = #tpu.dot_dimension_numbers<[1], [0], [0], [1], [0, 0, 1, 1], [], []>} : vector<16x32xf32>, vector<32x96xf32>, vector<16x96xf32> -> vector<16x96xf32>
    %c1_54 = arith.constant 1 : index
    %c0_55 = arith.constant 0 : index
    %c0_56 = arith.constant 0 : index
    %133 = vector.load %arg4[%c1_54, %c0_55, %c0_56] : memref<2x1x96xf32, #tpu.memory_space<vmem>>, vector<1x1x96xf32>
    %134 = vector.shape_cast %133 : vector<1x1x96xf32> to vector<1x96xf32>
    %135 = vector.broadcast %134 : vector<1x96xf32> to vector<16x96xf32>
    %136 = arith.addf %132, %135 : vector<16x96xf32>
    %137 = vector.extract_strided_slice %136 {offsets = [0, 0], sizes = [16, 16], strides = [1, 1]} : vector<16x96xf32> to vector<16x16xf32>
    %138 = vector.extract_strided_slice %136 {offsets = [0, 32], sizes = [16, 16], strides = [1, 1]} : vector<16x96xf32> to vector<16x16xf32>
    %139 = vector.extract_strided_slice %136 {offsets = [0, 64], sizes = [16, 16], strides = [1, 1]} : vector<16x96xf32> to vector<16x16xf32>
    %cst_57 = arith.constant dense<0.000000e+00> : vector<16x16xf32>
    %140 = tpu.matmul %137, %138, %cst_57 {dimension_numbers = #tpu.dot_dimension_numbers<[1], [1], [0], [0], [0, 0, 1, 0], [], []>} : vector<16x16xf32>, vector<16x16xf32>, vector<16x16xf32> -> vector<16x16xf32>
    %cst_58 = arith.constant 2.500000e-01 : f32
    %141 = vector.broadcast %cst_58 : f32 to vector<16x16xf32>
    %142 = arith.mulf %140, %141 : vector<16x16xf32>
    %143 = arith.addf %142, %1 : vector<16x16xf32>
    %cst_59 = arith.constant dense<0xFF800000> : vector<16xf32>
    %144 = vector.multi_reduction <maximumf>, %143, %cst_59 [1] : vector<16x16xf32> to vector<16xf32>
    %145 = vector.shape_cast %144 : vector<16xf32> to vector<16x1xf32>
    %146 = vector.broadcast %145 : vector<16x1xf32> to vector<16x16xf32>
    %147 = arith.subf %143, %146 : vector<16x16xf32>
    %148 = math.exp %147 : vector<16x16xf32>
    %cst_60 = arith.constant dense<0.000000e+00> : vector<16xf32>
    %149 = vector.multi_reduction <add>, %148, %cst_60 [1] : vector<16x16xf32> to vector<16xf32>
    %150 = vector.shape_cast %149 : vector<16xf32> to vector<16x1xf32>
    %151 = tpu.reciprocal %150 {approx = true} : vector<16x1xf32> -> vector<16x1xf32>
    %152 = vector.broadcast %151 : vector<16x1xf32> to vector<16x16xf32>
    %153 = arith.mulf %148, %152 : vector<16x16xf32>
    %cst_61 = arith.constant dense<0.000000e+00> : vector<16x16xf32>
    %154 = tpu.matmul %153, %139, %cst_61 {dimension_numbers = #tpu.dot_dimension_numbers<[1], [0], [0], [1], [0, 0, 1, 1], [], []>} : vector<16x16xf32>, vector<16x16xf32>, vector<16x16xf32> -> vector<16x16xf32>
    %155 = vector.extract_strided_slice %136 {offsets = [0, 16], sizes = [16, 16], strides = [1, 1]} : vector<16x96xf32> to vector<16x16xf32>
    %156 = vector.extract_strided_slice %136 {offsets = [0, 48], sizes = [16, 16], strides = [1, 1]} : vector<16x96xf32> to vector<16x16xf32>
    %157 = vector.extract_strided_slice %136 {offsets = [0, 80], sizes = [16, 16], strides = [1, 1]} : vector<16x96xf32> to vector<16x16xf32>
    %cst_62 = arith.constant dense<0.000000e+00> : vector<16x16xf32>
    %158 = tpu.matmul %155, %156, %cst_62 {dimension_numbers = #tpu.dot_dimension_numbers<[1], [1], [0], [0], [0, 0, 1, 0], [], []>} : vector<16x16xf32>, vector<16x16xf32>, vector<16x16xf32> -> vector<16x16xf32>
    %cst_63 = arith.constant 2.500000e-01 : f32
    %159 = vector.broadcast %cst_63 : f32 to vector<16x16xf32>
    %160 = arith.mulf %158, %159 : vector<16x16xf32>
    %161 = arith.addf %160, %1 : vector<16x16xf32>
    %cst_64 = arith.constant dense<0xFF800000> : vector<16xf32>
    %162 = vector.multi_reduction <maximumf>, %161, %cst_64 [1] : vector<16x16xf32> to vector<16xf32>
    %163 = vector.shape_cast %162 : vector<16xf32> to vector<16x1xf32>
    %164 = vector.broadcast %163 : vector<16x1xf32> to vector<16x16xf32>
    %165 = arith.subf %161, %164 : vector<16x16xf32>
    %166 = math.exp %165 : vector<16x16xf32>
    %cst_65 = arith.constant dense<0.000000e+00> : vector<16xf32>
    %167 = vector.multi_reduction <add>, %166, %cst_65 [1] : vector<16x16xf32> to vector<16xf32>
    %168 = vector.shape_cast %167 : vector<16xf32> to vector<16x1xf32>
    %169 = tpu.reciprocal %168 {approx = true} : vector<16x1xf32> -> vector<16x1xf32>
    %170 = vector.broadcast %169 : vector<16x1xf32> to vector<16x16xf32>
    %171 = arith.mulf %166, %170 : vector<16x16xf32>
    %cst_66 = arith.constant dense<0.000000e+00> : vector<16x16xf32>
    %172 = tpu.matmul %171, %157, %cst_66 {dimension_numbers = #tpu.dot_dimension_numbers<[1], [0], [0], [1], [0, 0, 1, 1], [], []>} : vector<16x16xf32>, vector<16x16xf32>, vector<16x16xf32> -> vector<16x16xf32>
    %173 = tpu.concatenate %154, %172 in 1 : vector<16x16xf32>, vector<16x16xf32> -> vector<16x32xf32>
    %c1_67 = arith.constant 1 : index
    %c0_68 = arith.constant 0 : index
    %c0_69 = arith.constant 0 : index
    %174 = vector.load %arg9[%c1_67, %c0_68, %c0_69] : memref<2x6x32xf32, #tpu.memory_space<vmem>>, vector<1x6x32xf32>
    %175 = vector.shape_cast %174 : vector<1x6x32xf32> to vector<6x32xf32>
    %c1_70 = arith.constant 1 : index
    %c0_71 = arith.constant 0 : index
    %c0_72 = arith.constant 0 : index
    %176 = vector.load %arg5[%c1_70, %c0_71, %c0_72] : memref<2x32x32xf32, #tpu.memory_space<vmem>>, vector<1x32x32xf32>
    %177 = vector.shape_cast %176 : vector<1x32x32xf32> to vector<32x32xf32>
    %cst_73 = arith.constant dense<0.000000e+00> : vector<16x32xf32>
    %178 = tpu.matmul %173, %177, %cst_73 {dimension_numbers = #tpu.dot_dimension_numbers<[1], [0], [0], [1], [0, 0, 1, 1], [], []>} : vector<16x32xf32>, vector<32x32xf32>, vector<16x32xf32> -> vector<16x32xf32>
    %179 = vector.extract_strided_slice %175 {offsets = [0, 0], sizes = [1, 32], strides = [1, 1]} : vector<6x32xf32> to vector<1x32xf32>
    %180 = vector.broadcast %179 : vector<1x32xf32> to vector<16x32xf32>
    %181 = arith.addf %178, %180 : vector<16x32xf32>
    %182 = arith.addf %129, %181 : vector<16x32xf32>
    %183 = vector.extract_strided_slice %175 {offsets = [1, 0], sizes = [1, 32], strides = [1, 1]} : vector<6x32xf32> to vector<1x32xf32>
    %184 = vector.extract_strided_slice %175 {offsets = [2, 0], sizes = [1, 32], strides = [1, 1]} : vector<6x32xf32> to vector<1x32xf32>
    %cst_74 = arith.constant dense<0.000000e+00> : vector<16xf32>
    %185 = vector.multi_reduction <add>, %182, %cst_74 [1] : vector<16x32xf32> to vector<16xf32>
    %186 = vector.shape_cast %185 : vector<16xf32> to vector<16x1xf32>
    %cst_75 = arith.constant 3.200000e+01 : f32
    %187 = vector.broadcast %cst_75 : f32 to vector<16x1xf32>
    %188 = arith.divf %186, %187 : vector<16x1xf32>
    %189 = vector.broadcast %188 : vector<16x1xf32> to vector<16x32xf32>
    %190 = arith.subf %182, %189 : vector<16x32xf32>
    %191 = arith.mulf %190, %190 : vector<16x32xf32>
    %cst_76 = arith.constant dense<0.000000e+00> : vector<16xf32>
    %192 = vector.multi_reduction <add>, %191, %cst_76 [1] : vector<16x32xf32> to vector<16xf32>
    %193 = vector.shape_cast %192 : vector<16xf32> to vector<16x1xf32>
    %cst_77 = arith.constant 3.200000e+01 : f32
    %194 = vector.broadcast %cst_77 : f32 to vector<16x1xf32>
    %195 = arith.divf %193, %194 : vector<16x1xf32>
    %196 = vector.broadcast %188 : vector<16x1xf32> to vector<16x32xf32>
    %197 = arith.subf %182, %196 : vector<16x32xf32>
    %cst_78 = arith.constant 9.99999996E-13 : f32
    %198 = vector.broadcast %cst_78 : f32 to vector<16x1xf32>
    %199 = arith.addf %195, %198 : vector<16x1xf32>
    %200 = math.rsqrt %199 : vector<16x1xf32>
    %201 = vector.broadcast %200 : vector<16x1xf32> to vector<16x32xf32>
    %202 = arith.mulf %197, %201 : vector<16x32xf32>
    %203 = vector.broadcast %183 : vector<1x32xf32> to vector<16x32xf32>
    %204 = arith.mulf %202, %203 : vector<16x32xf32>
    %205 = vector.broadcast %184 : vector<1x32xf32> to vector<16x32xf32>
    %206 = arith.addf %204, %205 : vector<16x32xf32>
    %c1_79 = arith.constant 1 : index
    %c0_80 = arith.constant 0 : index
    %c0_81 = arith.constant 0 : index
    %207 = vector.load %arg6[%c1_79, %c0_80, %c0_81] : memref<2x32x64xf32, #tpu.memory_space<vmem>>, vector<1x32x64xf32>
    %208 = vector.shape_cast %207 : vector<1x32x64xf32> to vector<32x64xf32>
    %cst_82 = arith.constant dense<0.000000e+00> : vector<16x64xf32>
    %209 = tpu.matmul %206, %208, %cst_82 {dimension_numbers = #tpu.dot_dimension_numbers<[1], [0], [0], [1], [0, 0, 1, 1], [], []>} : vector<16x32xf32>, vector<32x64xf32>, vector<16x64xf32> -> vector<16x64xf32>
    %c1_83 = arith.constant 1 : index
    %c0_84 = arith.constant 0 : index
    %c0_85 = arith.constant 0 : index
    %210 = vector.load %arg7[%c1_83, %c0_84, %c0_85] : memref<2x1x64xf32, #tpu.memory_space<vmem>>, vector<1x1x64xf32>
    %211 = vector.shape_cast %210 : vector<1x1x64xf32> to vector<1x64xf32>
    %212 = vector.broadcast %211 : vector<1x64xf32> to vector<16x64xf32>
    %213 = arith.addf %209, %212 : vector<16x64xf32>
    %214 = arith.mulf %213, %213 : vector<16x64xf32>
    %215 = arith.mulf %213, %214 : vector<16x64xf32>
    %cst_86 = arith.constant 4.471500e-02 : f32
    %216 = vector.broadcast %cst_86 : f32 to vector<16x64xf32>
    %217 = arith.mulf %216, %215 : vector<16x64xf32>
    %218 = arith.addf %213, %217 : vector<16x64xf32>
    %cst_87 = arith.constant 0.797884583 : f32
    %219 = vector.broadcast %cst_87 : f32 to vector<16x64xf32>
    %220 = arith.mulf %219, %218 : vector<16x64xf32>
    %221 = math.tanh %220 : vector<16x64xf32>
    %cst_88 = arith.constant 1.000000e+00 : f32
    %222 = vector.broadcast %cst_88 : f32 to vector<16x64xf32>
    %223 = arith.addf %222, %221 : vector<16x64xf32>
    %cst_89 = arith.constant 5.000000e-01 : f32
    %224 = vector.broadcast %cst_89 : f32 to vector<16x64xf32>
    %225 = arith.mulf %224, %223 : vector<16x64xf32>
    %226 = arith.mulf %213, %225 : vector<16x64xf32>
    %c1_90 = arith.constant 1 : index
    %c0_91 = arith.constant 0 : index
    %c0_92 = arith.constant 0 : index
    %227 = vector.load %arg8[%c1_90, %c0_91, %c0_92] : memref<2x64x32xf32, #tpu.memory_space<vmem>>, vector<1x64x32xf32>
    %228 = vector.shape_cast %227 : vector<1x64x32xf32> to vector<64x32xf32>
    %cst_93 = arith.constant dense<0.000000e+00> : vector<16x32xf32>
    %229 = tpu.matmul %226, %228, %cst_93 {dimension_numbers = #tpu.dot_dimension_numbers<[1], [0], [0], [1], [0, 0, 1, 1], [], []>} : vector<16x64xf32>, vector<64x32xf32>, vector<16x32xf32> -> vector<16x32xf32>
    %230 = vector.extract_strided_slice %175 {offsets = [3, 0], sizes = [1, 32], strides = [1, 1]} : vector<6x32xf32> to vector<1x32xf32>
    %231 = vector.broadcast %230 : vector<1x32xf32> to vector<16x32xf32>
    %232 = arith.addf %229, %231 : vector<16x32xf32>
    %233 = arith.addf %206, %232 : vector<16x32xf32>
    %234 = vector.extract_strided_slice %175 {offsets = [4, 0], sizes = [1, 32], strides = [1, 1]} : vector<6x32xf32> to vector<1x32xf32>
    %235 = vector.extract_strided_slice %175 {offsets = [5, 0], sizes = [1, 32], strides = [1, 1]} : vector<6x32xf32> to vector<1x32xf32>
    %cst_94 = arith.constant dense<0.000000e+00> : vector<16xf32>
    %236 = vector.multi_reduction <add>, %233, %cst_94 [1] : vector<16x32xf32> to vector<16xf32>
    %237 = vector.shape_cast %236 : vector<16xf32> to vector<16x1xf32>
    %cst_95 = arith.constant 3.200000e+01 : f32
    %238 = vector.broadcast %cst_95 : f32 to vector<16x1xf32>
    %239 = arith.divf %237, %238 : vector<16x1xf32>
    %240 = vector.broadcast %239 : vector<16x1xf32> to vector<16x32xf32>
    %241 = arith.subf %233, %240 : vector<16x32xf32>
    %242 = arith.mulf %241, %241 : vector<16x32xf32>
    %cst_96 = arith.constant dense<0.000000e+00> : vector<16xf32>
    %243 = vector.multi_reduction <add>, %242, %cst_96 [1] : vector<16x32xf32> to vector<16xf32>
    %244 = vector.shape_cast %243 : vector<16xf32> to vector<16x1xf32>
    %cst_97 = arith.constant 3.200000e+01 : f32
    %245 = vector.broadcast %cst_97 : f32 to vector<16x1xf32>
    %246 = arith.divf %244, %245 : vector<16x1xf32>
    %247 = vector.broadcast %239 : vector<16x1xf32> to vector<16x32xf32>
    %248 = arith.subf %233, %247 : vector<16x32xf32>
    %cst_98 = arith.constant 9.99999996E-13 : f32
    %249 = vector.broadcast %cst_98 : f32 to vector<16x1xf32>
    %250 = arith.addf %246, %249 : vector<16x1xf32>
    %251 = math.rsqrt %250 : vector<16x1xf32>
    %252 = vector.broadcast %251 : vector<16x1xf32> to vector<16x32xf32>
    %253 = arith.mulf %248, %252 : vector<16x32xf32>
    %254 = vector.broadcast %234 : vector<1x32xf32> to vector<16x32xf32>
    %255 = arith.mulf %253, %254 : vector<16x32xf32>
    %256 = vector.broadcast %235 : vector<1x32xf32> to vector<16x32xf32>
    %257 = arith.addf %255, %256 : vector<16x32xf32>
    %c0_99 = arith.constant 0 : index
    %c0_100 = arith.constant 0 : index
    %258 = vector.load %arg10[%c0_99, %c0_100] : memref<4x16xf32, #tpu.memory_space<vmem>>, vector<4x16xf32>
    %cst_101 = arith.constant dense<0.000000e+00> : vector<4x32xf32>
    %259 = tpu.matmul %258, %257, %cst_101 {dimension_numbers = #tpu.dot_dimension_numbers<[1], [0], [0], [1], [0, 0, 1, 1], [], []>} : vector<4x16xf32>, vector<16x32xf32>, vector<4x32xf32> -> vector<4x32xf32>
    %260 = vector.extract_strided_slice %259 {offsets = [0, 0], sizes = [2, 32], strides = [1, 1]} : vector<4x32xf32> to vector<2x32xf32>
    %261 = vector.extract_strided_slice %259 {offsets = [2, 0], sizes = [2, 32], strides = [1, 1]} : vector<4x32xf32> to vector<2x32xf32>
    %262 = arith.subf %260, %261 : vector<2x32xf32>
    %263 = math.absf %262 : vector<2x32xf32>
    %264 = arith.mulf %260, %261 : vector<2x32xf32>
    %265 = tpu.concatenate %263, %264 in 1 : vector<2x32xf32>, vector<2x32xf32> -> vector<2x64xf32>
    %c0_102 = arith.constant 0 : index
    %c0_103 = arith.constant 0 : index
    %266 = vector.load %arg11[%c0_102, %c0_103] : memref<64x128xf32, #tpu.memory_space<vmem>>, vector<64x128xf32>
    %cst_104 = arith.constant dense<0.000000e+00> : vector<2x128xf32>
    %267 = tpu.matmul %265, %266, %cst_104 {dimension_numbers = #tpu.dot_dimension_numbers<[1], [0], [0], [1], [0, 0, 1, 1], [], []>} : vector<2x64xf32>, vector<64x128xf32>, vector<2x128xf32> -> vector<2x128xf32>
    %c0_105 = arith.constant 0 : index
    %c0_106 = arith.constant 0 : index
    %268 = vector.load %arg12[%c0_105, %c0_106] : memref<1x128xf32, #tpu.memory_space<vmem>>, vector<1x128xf32>
    %269 = vector.broadcast %268 : vector<1x128xf32> to vector<2x128xf32>
    %270 = arith.addf %267, %269 : vector<2x128xf32>
    %c0_107 = arith.constant 0 : index
    %c0_108 = arith.constant 0 : index
    %271 = vector.load %arg13[%c0_107, %c0_108] : memref<2x128xf32, #tpu.memory_space<vmem>>, vector<2x128xf32>
    tpu.vector_store %arg13[%c0_107, %c0_108], %270 {strides = array<i32>} : memref<2x128xf32, #tpu.memory_space<vmem>>, vector<2x128xf32>,
    return
  }
  func.func @transform_0(%arg0: i32) -> (i32, i32) {
    %c0_i32 = arith.constant 0 : i32
    %c0_i32_0 = arith.constant 0 : i32
    %c0_i32_1 = arith.constant 0 : i32
    return %c0_i32, %c0_i32_0 : i32, i32
  }
  func.func @transform_1(%arg0: i32) -> (i32, i32) {
    %c0_i32 = arith.constant 0 : i32
    %c0_i32_0 = arith.constant 0 : i32
    %c0_i32_1 = arith.constant 0 : i32
    return %c0_i32, %c0_i32_0 : i32, i32
  }
  func.func @transform_2(%arg0: i32) -> (i32, i32, i32) {
    %c0_i32 = arith.constant 0 : i32
    %c0_i32_0 = arith.constant 0 : i32
    %c0_i32_1 = arith.constant 0 : i32
    %c0_i32_2 = arith.constant 0 : i32
    return %c0_i32, %c0_i32_0, %c0_i32_1 : i32, i32, i32
  }
  func.func @transform_3(%arg0: i32) -> (i32, i32, i32) {
    %c0_i32 = arith.constant 0 : i32
    %c0_i32_0 = arith.constant 0 : i32
    %c0_i32_1 = arith.constant 0 : i32
    %c0_i32_2 = arith.constant 0 : i32
    return %c0_i32, %c0_i32_0, %c0_i32_1 : i32, i32, i32
  }
  func.func @transform_4(%arg0: i32) -> (i32, i32, i32) {
    %c0_i32 = arith.constant 0 : i32
    %c0_i32_0 = arith.constant 0 : i32
    %c0_i32_1 = arith.constant 0 : i32
    %c0_i32_2 = arith.constant 0 : i32
    return %c0_i32, %c0_i32_0, %c0_i32_1 : i32, i32, i32
  }
  func.func @transform_5(%arg0: i32) -> (i32, i32, i32) {
    %c0_i32 = arith.constant 0 : i32
    %c0_i32_0 = arith.constant 0 : i32
    %c0_i32_1 = arith.constant 0 : i32
    %c0_i32_2 = arith.constant 0 : i32
    return %c0_i32, %c0_i32_0, %c0_i32_1 : i32, i32, i32
  }
  func.func @transform_6(%arg0: i32) -> (i32, i32, i32) {
    %c0_i32 = arith.constant 0 : i32
    %c0_i32_0 = arith.constant 0 : i32
    %c0_i32_1 = arith.constant 0 : i32
    %c0_i32_2 = arith.constant 0 : i32
    return %c0_i32, %c0_i32_0, %c0_i32_1 : i32, i32, i32
  }
  func.func @transform_7(%arg0: i32) -> (i32, i32, i32) {
    %c0_i32 = arith.constant 0 : i32
    %c0_i32_0 = arith.constant 0 : i32
    %c0_i32_1 = arith.constant 0 : i32
    %c0_i32_2 = arith.constant 0 : i32
    return %c0_i32, %c0_i32_0, %c0_i32_1 : i32, i32, i32
  }
  func.func @transform_8(%arg0: i32) -> (i32, i32, i32) {
    %c0_i32 = arith.constant 0 : i32
    %c0_i32_0 = arith.constant 0 : i32
    %c0_i32_1 = arith.constant 0 : i32
    %c0_i32_2 = arith.constant 0 : i32
    return %c0_i32, %c0_i32_0, %c0_i32_1 : i32, i32, i32
  }
  func.func @transform_9(%arg0: i32) -> (i32, i32) {
    %c0_i32 = arith.constant 0 : i32
    %c0_i32_0 = arith.constant 0 : i32
    %c0_i32_1 = arith.constant 0 : i32
    return %c0_i32, %c0_i32_0 : i32, i32
  }
  func.func @transform_10(%arg0: i32) -> (i32, i32) {
    %c0_i32 = arith.constant 0 : i32
    %c0_i32_0 = arith.constant 0 : i32
    %c0_i32_1 = arith.constant 0 : i32
    return %c0_i32, %c0_i32_0 : i32, i32
  }
  func.func @transform_11(%arg0: i32) -> (i32, i32) {
    %c0_i32 = arith.constant 0 : i32
    %c0_i32_0 = arith.constant 0 : i32
    %c0_i32_1 = arith.constant 0 : i32
    return %c0_i32, %c0_i32_0 : i32, i32
  }
  func.func @transform_12(%arg0: i32) -> (i32, i32) {
    %c0_i32 = arith.constant 0 : i32
    %c0_i32_0 = arith.constant 0 : i32
    %c0_i32_1 = arith.constant 0 : i32
    return %c0_i32, %c0_i32_0 : i32, i32
  }
}

</mosaic_0001>

<bundles_post_ra>
// kernel: _forward_impl.1
= control target key start
LH: loop header
LB: loop body
LE: loop exit
PB: predicated region body
PF: predicated region fallthrough
CT: control target
= control target key end

     0   :  { %vm57_vm0 = vcmask 261120   ;;  %s3096_s0 = inlined_call_operand.vmem [shape: f32[16,32], index: 0, kind: input, shape index: {}]   ;;  %s3097_s1 = inlined_call_operand.vmem [shape: f32[16,16], index: 1, kind: input, shape index: {}]   ;;  %s3098_s2 = inlined_call_operand.vmem [shape: f32[2,32,96], index: 2, kind: input, shape index: {}]   ;;  %s3099_s3 = inlined_call_operand.vmem [shape: f32[2,1,96], index: 3, kind: input, shape index: {}]   ;;  %s3100_s4 = inlined_call_operand.vmem [shape: f32[2,32,32], index: 4, kind: input, shape index: {}]   ;;  %s3101_s5 = inlined_call_operand.vmem [shape: f32[2,32,64], index: 5, kind: input, shape index: {}]   ;;  %s3102_s6 = inlined_call_operand.vmem [shape: f32[2,1,64], index: 6, kind: input, shape index: {}]   ;;  %s3103_s7 = inlined_call_operand.vmem [shape: f32[2,64,32], index: 7, kind: input, shape index: {}]   ;;  %s3104_s8 = inlined_call_operand.vmem [shape: f32[2,6,32], index: 8, kind: input, shape index: {}]   ;;  %s3105_s9 = inlined_call_operand.vmem [shape: f32[4,16], index: 9, kind: input, shape index: {}]   ;;  %s3106_s10 = inlined_call_operand.vmem [shape: f32[64,128], index: 10, kind: input, shape index: {}]   ;;  %s3107_s11 = inlined_call_operand.vmem [shape: f32[1,128], index: 11, kind: input, shape index: {}]   ;;  %s3108_s12 = inlined_call_operand.hbm [shape: f32[2,128], index: 12, kind: output, shape index: {}]  }
   0x1   :  { %v46_v0 = vld [vmem:[%s3098_s2] sm:$0xff]  ;;  %v47_v1 = vld [vmem:[%s3098_s2 + $0x8] sm:$0xff]  ;;  %v48_v2 = vld [vmem:[%s3098_s2 + $0x10] sm:$0xff] }
   0x2   :  { %v2363_v3 = vpack.c.bf16 %v47_v1, %v46_v0  ;;  %v49_v4 = vld [vmem:[%s3098_s2 + $0x18] sm:$0xff]  ;;  %v2720_v5 = vld [vmem:[%s3096_s0] sm:$0xff] }
   0x3   :  { %v2367_v6 = vpack.c.bf16 %v49_v4, %v48_v2  ;;  %2185 = vmatprep.mubr.msk.f32.mxu0 %vm57_vm0, %v2720_v5 }
   0x4   :  { %17 = vsyncpa [#allocation3], 0  ;;  %2364 = vmatprep.subr.bf16.mxu0 %v2363_v3  ;;  %v2727_v7 = vld [vmem:[%s3096_s0 + $0x8] sm:$0xff]  ;;  %v2007_v8 = vld [vmem:[%s3099_s3] ss:$0 sm:$0xff]  ;;  %vm145_vm1 = vcmask 130048  }
   0x5   :  { %2366 = vmatpush3.bf16.msra.mxu0 %v2363_v3  ;;  %s2629_s17 = smov 112   ;;  %s2630_s0 = smov 96   ;;  %vm2745_vm2 = vmpackc.low %vm145_vm1, %vm145_vm1  ;;  %v2763_v26 = vld [vmem:[%s3097_s1 + $0x8] sm:$0xff]  ;;  %v2768_v29 = vld [vmem:[%s3097_s1] sm:$0xff]  ;;  %vm809_vm3 = vcmask 523264   ;;  %vm2636_vm4 = vmmov 0  }
   0x6   :  { %2368 = vmatprep.subr.bf16.mxu0 %v2367_v6  ;;  %s2631_s18 = smov 80   ;;  %s2632_s1 = smov 64  }
   0x7   :  { %s2633_s23 = smov 48   ;;  %s2634_s14 = smov 16  }
   0x9   :  { %2370 = vmatpush3.bf16.msra.mxu0 %v2367_v6 }
   0xc   :  { %2186 = vmatmul.mubr.msk.f32.vlgmr.msra.gmra.mrb[0].mxu0 %vm57_vm0, %v2727_v7 }
  0xdf   :  { %v2187_v9 = vpop.f32.mrb[0].mxu0 }
  0xe0   :  { %v136_v10 = vadd.f32 %v2187_v9, %v2007_v8  ;;  %v130_v11 = vpop.f32.mrb[1].mxu0 }
  0xe1   :  { %v131_v12 = vadd.f32 %v2007_v8, %v130_v11 }
  0xe3   :  { %342 = vrot.lane.b32.xlu1 %v131_v12, %s2629_s17  ;;  %2192 = vmatprep.mubr.msk.f32.mxu1 %vm145_vm1, %v131_v12  ;;  %v2736_v13 = vpack.i.bf16 %v136_v10, %v131_v12 }
  0xe5   :  { %2510 = vrot.lane.b32.xlu0 %v2736_v13, %s2630_s0 }
  0xe7   :  { %344 = vrot.lane.b32.xlu1 %v136_v10, %s2629_s17 }
  0xe9   :  { %2515 = vrot.lane.b32.xlu0 %v2736_v13, %s2631_s18 }
 0x155   :  { %v343_v23 = vpop.permute.xlu1 %342 }
 0x157   :  { %v2511_v14 = vpop.permute.xlu0 %2510 }
 0x158   :  { %v2513_v15 = vunpack.i.h.bf16 %v2511_v14  ;;  %v2512_v16 = vunpack.i.l.bf16 %v2511_v14 }
 0x159   :  { %v345_v24 = vpop.permute.xlu1 %344 }
 0x15a   :  { %v2371_v18 = vpack.c.bf16 %v2513_v15, %v2512_v16 }
 0x15b   :  { %v2516_v19 = vpop.permute.xlu0 %2515 }
 0x15c   :  { %v2518_v20 = vunpack.i.h.bf16 %v2516_v19  ;;  %v2517_v21 = vunpack.i.l.bf16 %v2516_v19  ;;  %2373 = vmatprep.subr.msk.bf16.mxu1 %vm2745_vm2, %v2371_v18 }
 0x15d   :  { %2376 = vmatpush3.bf16.xpose.msk.msra.mxu1 %vm2745_vm2, %v2371_v18 }
 0x15e   :  { %v2381_v22 = vpack.c.bf16 %v2518_v20, %v2517_v21 }
 0x160   :  { %2383 = vmatprep.subr.msk.bf16.mxu1 %vm2745_vm2, %v2381_v22 }
 0x164   :  { %2193 = vmatmul.mubr.msk.f32.vlgmr.msra.gmra.mrb[0].mxu1 %vm145_vm1, %v136_v10 }
 0x165   :  { %2386 = vmatpush3.bf16.xpose.msk.msra.mxu1 %vm2745_vm2, %v2381_v22  ;;  %2206 = vmatprep.mubr.msk.f32.mxu1 %vm145_vm1, %v343_v23  ;;  %v557_v22 = vld [vmem:[%s3100_s4] sm:$0xff]  ;;  %v558_v23 = vld [vmem:[%s3100_s4 + $0x8] sm:$0xff] }
 0x16c   :  { %2207 = vmatmul.mubr.msk.f32.vlgmr.msra.gmra.mrb[2].mxu1 %vm145_vm1, %v345_v24  ;;  %v2391_v24 = vpack.c.bf16 %v558_v23, %v557_v22  ;;  %v797_v22 = vld [vmem:[%s3103_s7] sm:$0xff]  ;;  %v798_v23 = vld [vmem:[%s3103_s7 + $0x8] sm:$0xff] }
 0x237   :  { %v2194_v25 = vpop.f32.mrb[0].mxu1 }
 0x238   :  { %v230_v27 = vmul.f32 0.25, %v2194_v25  ;;  %v220_v28 = vpop.f32.mrb[1].mxu1  ;;  %v559_v25 = vld [vmem:[%s3100_s4 + $0x10] sm:$0xff] }
 0x239   :  { %v229_v30 = vmul.f32 0.25, %v220_v28 }
 0x23a   :  { %v232_v31 = vadd.f32 %v230_v27, %v2763_v26  ;;  %v560_v27 = vld [vmem:[%s3100_s4 + $0x18] sm:$0xff] }
 0x23b   :  { %v231_v32 = vadd.f32 %v229_v30, %v2768_v29  ;;  %v2395_v28 = vpack.c.bf16 %v560_v27, %v559_v25  ;;  %v799_v25 = vld [vmem:[%s3103_s7 + $0x10] sm:$0xff]  ;;  %v800_v27 = vld [vmem:[%s3103_s7 + $0x18] sm:$0xff] }
 0x23c   :  { %v236_v33 = vsel %vm145_vm1, %v232_v31, -inf }
 0x23d   :  { %237 = vmax.xlane.f32.xlu1 %v236_v33  ;;  %v233_v34 = vsel %vm145_vm1, %v231_v32, -inf }
 0x23e   :  { %234 = vmax.xlane.f32.xlu0 %v233_v34 }
 0x23f   :  { %v2208_v35 = vpop.f32.mrb[2].mxu1 }
 0x240   :  { %v424_v36 = vpop.f32.mrb[3].mxu1  ;;  %v434_v37 = vmul.f32 0.25, %v2208_v35 }
 0x241   :  { %v433_v38 = vmul.f32 0.25, %v424_v36 }
 0x242   :  { %v436_v41 = vadd.f32 %v434_v37, %v2763_v26 }
 0x243   :  { %v435_v39 = vadd.f32 %v433_v38, %v2768_v29  ;;  %v561_v38 = vlaneseq }
 0x244   :  { %v440_v42 = vsel %vm145_vm1, %v436_v41, -inf }
 0x245   :  { %v437_v40 = vsel %vm145_vm1, %v435_v39, -inf }
 0x246   :  { %438 = vmax.xlane.f32.xlu0 %v437_v40 }
 0x24a   :  { %441 = vmax.xlane.f32.xlu0 %v440_v42 }
 0x2ca   :  { %v238_v43 = vpop.xlane.xlu1 %237 }
 0x2cb   :  { %v240_v44 = vsub.f32 %v232_v31, %v238_v43  ;;  %v235_v45 = vpop.xlane.xlu0 %234 }
 0x2cc   :  { %v239_v46 = vsub.f32 %v231_v32, %v235_v45 }
 0x2cd   :  { %v243_v47 = vmul.f32 1.442695, %v240_v44 }
 0x2ce   :  { %v241_v48 = vmul.f32 1.442695, %v239_v46 }
 0x2cf   :  { %2549 = vpow2.f32 %v243_v47 }
 0x2d0   :  { %2551 = vpow2.f32 %v241_v48 }
 0x2d3   :  { %v439_v49 = vpop.xlane.xlu0 %438 }
 0x2d4   :  { %v443_v50 = vsub.f32 %v435_v39, %v439_v49  ;;  %v2808_v39 = vshrl.u32 %v561_v38, 7 }
 0x2d6   :  { %v445_v51 = vmul.f32 1.442695, %v443_v50  ;;  %v563_v40 = vsub.s32 0, %v2808_v39 }
 0x2d7   :  { %v442_v52 = vpop.xlane.xlu0 %441 }
 0x2d8   :  { %2553 = vpow2.f32 %v445_v51  ;;  %v444_v53 = vsub.f32 %v436_v41, %v442_v52  ;;  %v2814_v41 = vld [vmem:[%s3104_s8] sm:$0x3f] }
 0x2d9   :  { %v2550_v54 = vpop.eup %2549  ;;  %v564_v42 = vrot.slane %v2814_v41, %v563_v40 }
 0x2da   :  { %v2552_v55 = vpop.eup %2551  ;;  %v447_v56 = vmul.f32 1.442695, %v444_v53  ;;  %v248_v57 = vsel %vm145_vm1, %v2550_v54, 0.0 }
 0x2db   :  { %249 = vadd.xlane.f32.xlu0 %v248_v57  ;;  %v245_v58 = vsel %vm145_vm1, %v2552_v55, 0.0 }
 0x2dc   :  { %2555 = vpow2.f32 %v447_v56  ;;  %246 = vadd.xlane.f32.xlu1 %v245_v58 }
 0x2e2   :  { %v2554_v59 = vpop.eup %2553 }
 0x2e3   :  { %v449_v60 = vsel %vm145_vm1, %v2554_v59, 0.0 }
 0x2e4   :  { %450 = vadd.xlane.f32.xlu1 %v449_v60  ;;  %v688_v60 = vld [vmem:[%s3101_s5 + $0x8] sm:$0xff] }
 0x2e6   :  { %v2556_v61 = vpop.eup %2555 }
 0x2e7   :  { %v452_v62 = vsel %vm145_vm1, %v2556_v61, 0.0 }
 0x2e8   :  { %453 = vadd.xlane.f32.xlu0 %v452_v62  ;;  %v689_v62 = vld [vmem:[%s3101_s5 + $0x10] sm:$0xff] }
 0x2f5   :  { %2520 = vrot.lane.b32.xlu1 %v2736_v13, %s2632_s1 }
 0x2fe   :  { %2525 = vrot.lane.b32.xlu0 %v2736_v13, %s2633_s23 }
 0x368   :  { %v250_v0 = vpop.xlane.xlu0 %249 }
 0x369   :  { %v247_v63 = vpop.xlane.xlu1 %246 }
 0x36a   :  { %2557 = vrcp.f32 %v247_v63  ;;  %v690_v63 = vld [vmem:[%s3101_s5 + $0x18] sm:$0xff] }
 0x36b   :  { %2559 = vrcp.f32 %v250_v0  ;;  %v2403_v0 = vpack.c.bf16 %v690_v63, %v689_v62 }
 0x371   :  { %v451_v1 = vpop.xlane.xlu1 %450 }
 0x372   :  { %2561 = vrcp.f32 %v451_v1 }
 0x374   :  { %v2558_v2 = vpop.eup %2557 }
 0x375   :  { %v2521_v3 = vpop.permute.xlu1 %2520  ;;  %v454_v4 = vpop.xlane.xlu0 %453  ;;  %v253_v6 = vmul.f32 %v2558_v2, %v2552_v55 }
 0x376   :  { %v2523_v8 = vunpack.i.h.bf16 %v2521_v3  ;;  %v2522_v9 = vunpack.i.l.bf16 %v2521_v3  ;;  %2563 = vrcp.f32 %v454_v4  ;;  %v2560_v11 = vpop.eup %2559 }
 0x377   :  { %2199 = vmatprep.mubr.msk.f32.mxu0 %vm145_vm1, %v253_v6  ;;  %v254_v16 = vmul.f32 %v2560_v11, %v2550_v54 }
 0x378   :  { %v2377_v10 = vpack.c.bf16 %v2523_v8, %v2522_v9  ;;  %v677_v9 = vsub.s32 1, %v2808_v39 }
 0x379   :  { %v2526_v12 = vpop.permute.xlu0 %2525 }
 0x37a   :  { %v2528_v14 = vunpack.i.h.bf16 %v2526_v12  ;;  %v2527_v13 = vunpack.i.l.bf16 %v2526_v12  ;;  %2378 = vmatprep.subr.bf16.mxu0 %v2377_v10  ;;  %v678_v11 = vrot.slane %v2814_v41, %v677_v9 }
 0x37b   :  { %2380 = vmatpush3.bf16.msra.mxu0 %v2377_v10  ;;  %v683_v10 = vsub.s32 2, %v2808_v39 }
 0x37c   :  { %v2562_v15 = vpop.eup %2561  ;;  %v2387_v18 = vpack.c.bf16 %v2528_v14, %v2527_v13 }
 0x37d   :  { %v457_v19 = vmul.f32 %v2562_v15, %v2554_v59  ;;  %v684_v13 = vrot.slane %v2814_v41, %v683_v10 }
 0x37e   :  { %2200 = vmatmul.mubr.msk.f32.vlgmr.msra.gmra.mrb[2].mxu0 %vm145_vm1, %v254_v16  ;;  %2388 = vmatprep.subr.bf16.mxu0 %v2387_v18 }
 0x37f   :  { %2390 = vmatpush3.bf16.msra.mxu0 %v2387_v18  ;;  %2213 = vmatprep.mubr.msk.f32.mxu0 %vm145_vm1, %v457_v19 }
 0x380   :  { %v2564_v20 = vpop.eup %2563  ;;  %2392 = vmatprep.subr.bf16.mxu0 %v2391_v24 }
 0x381   :  { %v458_v21 = vmul.f32 %v2564_v20, %v2556_v61 }
 0x383   :  { %2214 = vmatmul.mubr.msk.f32.vlgmr.msra.gmra.mrb[4].mxu0 %vm145_vm1, %v458_v21 }
 0x384   :  { %2394 = vmatpush3.bf16.msra.mxu0 %v2391_v24  ;;  %v2407_v24 = vpack.c.bf16 %v798_v23, %v797_v22  ;;  %v2030_v22 = vld [vmem:[%s3098_s2 + $0x28] sm:$0xff] }
 0x385   :  { %2396 = vmatprep.subr.bf16.mxu0 %v2395_v28 }
 0x388   :  { %2398 = vmatpush3.bf16.msra.mxu0 %v2395_v28  ;;  %v2411_v28 = vpack.c.bf16 %v800_v27, %v799_v25  ;;  %v2032_v25 = vld [vmem:[%s3098_s2 + $0x38] sm:$0xff] }
 0x389   :  { %2408 = vmatprep.subr.bf16.mxu0 %v2407_v24 }
 0x451   :  { %v2201_v30 = vpop.f32.mrb[2].mxu0 }
 0x452   :  { %v333_v31 = vpop.f32.mrb[3].mxu0 }
 0x456   :  { %v2215_v32 = vpop.f32.mrb[4].mxu0 }
 0x457   :  { %v537_v33 = vpop.f32.mrb[5].mxu0 }
 0x458   :  { %548 = vrot.lane.b32.xlu1 %v537_v33, %s2634_s14  ;;  %v803_v33 = vld [vmem:[%s3103_s7 + $0x30] sm:$0xff] }
 0x45c   :  { %550 = vrot.lane.b32.xlu1 %v2215_v32, %s2634_s14 }
 0x4ca   :  { %v549_v34 = vpop.permute.xlu1 %548 }
 0x4cb   :  { %v554_v35 = vsel %vm145_vm1, %v333_v31, %v549_v34  ;;  %v802_v31 = vld [vmem:[%s3103_s7 + $0x28] sm:$0xff]  ;;  %v804_v34 = vld [vmem:[%s3103_s7 + $0x38] sm:$0xff] }
 0x4cc   :  { %2224 = vmatprep.mubr.msk.f32.mxu0 %vm57_vm0, %v554_v35  ;;  %v2419_v35 = vpack.c.bf16 %v804_v34, %v803_v33 }
 0x4ce   :  { %v551_v36 = vpop.permute.xlu1 %550 }
 0x4cf   :  { %v555_v37 = vsel %vm145_vm1, %v2201_v30, %v551_v36  ;;  %v801_v30 = vld [vmem:[%s3103_s7 + $0x20] sm:$0xff] }
 0x4d0   :  { %2225 = vmatmul.mubr.msk.f32.vlgmr.msra.gmra.mrb[6].mxu0 %vm57_vm0, %v555_v37  ;;  %v2415_v32 = vpack.c.bf16 %v802_v31, %v801_v30  ;;  %v2024_v36 = vld [vmem:[%s3102_s6] ss:$0 sm:$0xff] }
 0x4d1   :  { %2410 = vmatpush3.bf16.msra.mxu0 %v2407_v24  ;;  %v2031_v24 = vld [vmem:[%s3098_s2 + $0x30] sm:$0xff] }
 0x4d2   :  { %2412 = vmatprep.subr.bf16.mxu0 %v2411_v28  ;;  %v2427_v27 = vpack.c.bf16 %v2032_v25, %v2031_v24 }
 0x4d5   :  { %2414 = vmatpush3.bf16.msra.mxu0 %v2411_v28 }
 0x4d6   :  { %2416 = vmatprep.subr.bf16.mxu0 %v2415_v32 }
 0x4d9   :  { %2418 = vmatpush3.bf16.msra.mxu0 %v2415_v32 }
 0x4da   :  { %2420 = vmatprep.subr.bf16.mxu0 %v2419_v35 }
 0x4dd   :  { %2422 = vmatpush3.bf16.msra.mxu0 %v2419_v35  ;;  %v921_v35 = vsub.s32 4, %v2808_v39 }
 0x5a3   :  { %v2226_v43 = vpop.f32.mrb[6].mxu0 }
 0x5a4   :  { %v643_v44 = vadd.f32 %v2226_v43, %v564_v42  ;;  %v637_v45 = vpop.f32.mrb[7].mxu0 }
 0x5a5   :  { %v638_v46 = vadd.f32 %v637_v45, %v564_v42 }
 0x5a6   :  { %v647_v47 = vadd.f32 %v643_v44, %v2727_v7 }
 0x5a7   :  { %v646_v48 = vadd.f32 %v638_v46, %v2720_v5  ;;  %v687_v5 = vld [vmem:[%s3101_s5] sm:$0xff] }
 0x5a8   :  { %v651_v49 = vsel %vm57_vm0, %v647_v47, 0.0  ;;  %v2399_v61 = vpack.c.bf16 %v688_v60, %v687_v5  ;;  %v807_v60 = vsub.s32 3, %v2808_v39 }
 0x5a9   :  { %652 = vadd.xlane.f32.xlu1 %v651_v49  ;;  %v648_v50 = vsel %vm57_vm0, %v646_v48, 0.0 }
 0x5aa   :  { %649 = vadd.xlane.f32.xlu0 %v648_v50  ;;  %2400 = vmatprep.subr.bf16.mxu1 %v2399_v61 }
 0x5ab   :  { %2402 = vmatpush3.bf16.msra.mxu1 %v2399_v61  ;;  %v808_v61 = vrot.slane %v2814_v41, %v807_v60 }
 0x5ac   :  { %2404 = vmatprep.subr.bf16.mxu1 %v2403_v0 }
 0x5af   :  { %2406 = vmatpush3.bf16.msra.mxu1 %v2403_v0 }
 0x636   :  { %v653_v51 = vpop.xlane.xlu1 %652 }
 0x637   :  { %v656_v52 = vmul.f32 0.03125, %v653_v51  ;;  %v650_v53 = vpop.xlane.xlu0 %649 }
 0x638   :  { %v655_v54 = vmul.f32 0.03125, %v650_v53 }
 0x639   :  { %v658_v55 = vsub.f32 %v647_v47, %v656_v52 }
 0x63a   :  { %v657_v56 = vsub.f32 %v646_v48, %v655_v54 }
 0x63b   :  { %v660_v59 = vmul.f32 %v658_v55, %v658_v55 }
 0x63c   :  { %v659_v57 = vmul.f32 %v657_v56, %v657_v56 }
 0x63d   :  { %v664_v7 = vsel %vm57_vm0, %v660_v59, 0.0 }
 0x63e   :  { %v661_v58 = vsel %vm57_vm0, %v659_v57, 0.0 }
 0x63f   :  { %662 = vadd.xlane.f32.xlu0 %v661_v58 }
 0x643   :  { %665 = vadd.xlane.f32.xlu0 %v664_v7 }
 0x6cc   :  { %v663_v1 = vpop.xlane.xlu0 %662 }
 0x6cd   :  { %v667_v2 = vmul.f32 0.03125, %v663_v1 }
 0x6cf   :  { %v669_v3 = vadd.f32 1e-12, %v667_v2 }
 0x6d0   :  { %v666_v4 = vpop.xlane.xlu0 %665 }
 0x6d1   :  { %2565 = vrsqrt.f32 %v669_v3  ;;  %v668_v6 = vmul.f32 0.03125, %v666_v4 }
 0x6d3   :  { %v670_v8 = vadd.f32 1e-12, %v668_v6 }
 0x6d5   :  { %2567 = vrsqrt.f32 %v670_v8 }
 0x6db   :  { %v2566_v12 = vpop.eup %2565 }
 0x6dc   :  { %v673_v14 = vmul.f32 %v2566_v12, %v657_v56 }
 0x6de   :  { %v679_v15 = vmul.f32 %v678_v11, %v673_v14 }
 0x6df   :  { %v2568_v16 = vpop.eup %2567 }
 0x6e0   :  { %v674_v18 = vmul.f32 %v2568_v16, %v658_v55  ;;  %v685_v19 = vadd.f32 %v684_v13, %v679_v15 }
 0x6e2   :  { %v680_v20 = vmul.f32 %v678_v11, %v674_v18  ;;  %2235 = vmatprep.mubr.msk.f32.mxu1 %vm57_vm0, %v685_v19 }
 0x6e4   :  { %v686_v21 = vadd.f32 %v684_v13, %v680_v20 }
 0x6e6   :  { %2236 = vmatmul.mubr.msk.f32.vlgmr.msra.gmra.mrb[4].mxu1 %vm57_vm0, %v686_v21 }
 0x7b9   :  { %v2237_v37 = vpop.f32.mrb[4].mxu1 }
 0x7ba   :  { %v776_v38 = vadd.f32 %v2237_v37, %v2024_v36  ;;  %v770_v42 = vpop.f32.mrb[5].mxu1  ;;  %v922_v37 = vrot.slane %v2814_v41, %v921_v35 }
 0x7bb   :  { %v771_v43 = vadd.f32 %v2024_v36, %v770_v42  ;;  %v927_v36 = vsub.s32 5, %v2808_v39  ;;  %v1904_v39 = vld [vmem:[%s3106_s10] sm:$0xff] }
 0x7bc   :  { %v780_v44 = vmul.f32 %v776_v38, %v776_v38 }
 0x7bd   :  { %v779_v45 = vmul.f32 %v771_v43, %v771_v43 }
 0x7be   :  { %v782_v46 = vmul.f32 %v780_v44, %v776_v38 }
 0x7bf   :  { %v781_v47 = vmul.f32 %v779_v45, %v771_v43  ;;  %v928_v45 = vrot.slane %v2814_v41, %v927_v36 }
 0x7c0   :  { %v784_v48 = vmul.f32 0.044715, %v782_v46 }
 0x7c1   :  { %v783_v49 = vmul.f32 0.044715, %v781_v47 }
 0x7c2   :  { %v786_v50 = vadd.f32 %v784_v48, %v776_v38 }
 0x7c3   :  { %v785_v51 = vadd.f32 %v783_v49, %v771_v43 }
 0x7c4   :  { %v788_v52 = vmul.f32 0.7978846, %v786_v50  ;;  %v2034_v50 = vld [vmem:[%s3099_s3 + $0x1] ss:$0 sm:$0xff] }
 0x7c5   :  { %v787_v53 = vmul.f32 0.7978846, %v785_v51 }
 0x7c6   :  { %2569 = vtanh.f32 %v788_v52 }
 0x7c7   :  { %2571 = vtanh.f32 %v787_v53 }
 0x7d0   :  { %v2570_v54 = vpop.eup %2569 }
 0x7d1   :  { %v2572_v55 = vpop.eup %2571  ;;  %v792_v56 = vadd.f32 1.0, %v2570_v54 }
 0x7d2   :  { %v791_v57 = vadd.f32 1.0, %v2572_v55 }
 0x7d3   :  { %v794_v58 = vmul.f32 0.5, %v792_v56 }
 0x7d4   :  { %v793_v59 = vmul.f32 0.5, %v791_v57 }
 0x7d5   :  { %v796_v5 = vmul.f32 %v794_v58, %v776_v38 }
 0x7d6   :  { %v795_v7 = vmul.f32 %v793_v59, %v771_v43 }
 0x7d8   :  { %2254 = vmatprep.mubr.msk.f32.mxu0 %vm809_vm3, %v795_v7 }
 0x7d9   :  { %2255 = vmatmul.mubr.msk.f32.vlgmr.msra.gmra.mrb[8].mxu0 %vm809_vm3, %v796_v5 }
 0x8ac   :  { %v2256_v62 = vpop.f32.mrb[8].mxu0 }
 0x8ad   :  { %v888_v63 = vadd.f32 %v2256_v62, %v808_v61  ;;  %v882_v0 = vpop.f32.mrb[9].mxu0 }
 0x8ae   :  { %v883_v1 = vadd.f32 %v882_v0, %v808_v61 }
 0x8af   :  { %v892_v2 = vadd.f32 %v888_v63, %v686_v21 }
 0x8b0   :  { %v891_v3 = vadd.f32 %v883_v1, %v685_v19  ;;  %v2029_v19 = vld [vmem:[%s3098_s2 + $0x20] sm:$0xff] }
 0x8b1   :  { %v896_v4 = vsel %vm57_vm0, %v892_v2, 0.0  ;;  %v2423_v23 = vpack.c.bf16 %v2030_v22, %v2029_v19 }
 0x8b2   :  { %897 = vadd.xlane.f32.xlu0 %v896_v4  ;;  %v893_v6 = vsel %vm57_vm0, %v891_v3, 0.0 }
 0x8b3   :  { %894 = vadd.xlane.f32.xlu1 %v893_v6  ;;  %2424 = vmatprep.subr.bf16.mxu1 %v2423_v23 }
 0x8b4   :  { %2426 = vmatpush3.bf16.msra.mxu1 %v2423_v23 }
 0x8b5   :  { %2428 = vmatprep.subr.bf16.mxu1 %v2427_v27 }
 0x8b8   :  { %2430 = vmatpush3.bf16.msra.mxu1 %v2427_v27 }
 0x93f   :  { %v898_v8 = vpop.xlane.xlu0 %897 }
 0x940   :  { %v900_v11 = vmul.f32 0.03125, %v898_v8  ;;  %v895_v12 = vpop.xlane.xlu1 %894 }
 0x941   :  { %v899_v14 = vmul.f32 0.03125, %v895_v12 }
 0x942   :  { %v902_v13 = vsub.f32 %v892_v2, %v900_v11 }
 0x943   :  { %v901_v15 = vsub.f32 %v891_v3, %v899_v14 }
 0x944   :  { %v904_v16 = vmul.f32 %v902_v13, %v902_v13 }
 0x945   :  { %v903_v18 = vmul.f32 %v901_v15, %v901_v15 }
 0x946   :  { %v908_v20 = vsel %vm57_vm0, %v904_v16, 0.0 }
 0x947   :  { %909 = vadd.xlane.f32.xlu0 %v908_v20  ;;  %v905_v21 = vsel %vm57_vm0, %v903_v18, 0.0 }
 0x948   :  { %906 = vadd.xlane.f32.xlu1 %v905_v21 }
 0x9d4   :  { %v910_v28 = vpop.xlane.xlu0 %909 }
 0x9d5   :  { %v912_v30 = vmul.f32 0.03125, %v910_v28  ;;  %v907_v31 = vpop.xlane.xlu1 %906 }
 0x9d6   :  { %v911_v32 = vmul.f32 0.03125, %v907_v31 }
 0x9d7   :  { %v914_v33 = vadd.f32 1e-12, %v912_v30 }
 0x9d8   :  { %v913_v34 = vadd.f32 1e-12, %v911_v32 }
 0x9d9   :  { %2573 = vrsqrt.f32 %v914_v33 }
 0x9da   :  { %2575 = vrsqrt.f32 %v913_v34 }
 0x9e3   :  { %v2574_v38 = vpop.eup %2573 }
 0x9e4   :  { %v2576_v42 = vpop.eup %2575  ;;  %v918_v43 = vmul.f32 %v2574_v38, %v902_v13 }
 0x9e5   :  { %v917_v44 = vmul.f32 %v2576_v42, %v901_v15 }
 0x9e6   :  { %v924_v46 = vmul.f32 %v922_v37, %v918_v43 }
 0x9e7   :  { %v923_v47 = vmul.f32 %v922_v37, %v917_v44 }
 0x9e8   :  { %v2906_v49 = vadd.f32 %v928_v45, %v924_v46 }
 0x9e9   :  { %v2904_v48 = vadd.f32 %v928_v45, %v923_v47 }
 0x9eb   :  { %2265 = vmatprep.mubr.msk.f32.mxu1 %vm57_vm0, %v2904_v48 }
 0x9ec   :  { %2266 = vmatmul.mubr.msk.f32.vlgmr.msra.gmra.mrb[6].mxu1 %vm57_vm0, %v2906_v49 }
 0xabf   :  { %v2267_v51 = vpop.f32.mrb[6].mxu1 }
 0xac0   :  { %v1022_v52 = vadd.f32 %v2267_v51, %v2034_v50  ;;  %v1016_v53 = vpop.f32.mrb[7].mxu1 }
 0xac1   :  { %v1017_v41 = vadd.f32 %v2034_v50, %v1016_v53 }
 0xac3   :  { %2272 = vmatprep.mubr.msk.f32.mxu1 %vm145_vm1, %v1017_v41  ;;  %v2916_v54 = vpack.i.bf16 %v1022_v52, %v1017_v41 }
 0xac5   :  { %2535 = vrot.lane.b32.xlu0 %v2916_v54, %s2631_s18  ;;  %2530 = vrot.lane.b32.xlu1 %v2916_v54, %s2630_s0 }
 0xac9   :  { %1227 = vrot.lane.b32.xlu1 %v1017_v41, %s2629_s17 }
 0xacd   :  { %1229 = vrot.lane.b32.xlu1 %v1022_v52, %s2629_s17  ;;  %s2638_s17 = smov 32  }
 0xb37   :  { %v2536_v55 = vpop.permute.xlu0 %2535  ;;  %v2531_v56 = vpop.permute.xlu1 %2530 }
 0xb38   :  { %v2538_v57 = vunpack.i.h.bf16 %v2536_v55  ;;  %v2537_v58 = vunpack.i.l.bf16 %v2536_v55  ;;  %v2533_v59 = vunpack.i.h.bf16 %v2531_v56  ;;  %v2532_v7 = vunpack.i.l.bf16 %v2531_v56 }
 0xb3a   :  { %v2431_v5 = vpack.c.bf16 %v2533_v59, %v2532_v7  ;;  %v2441_v61 = vpack.c.bf16 %v2538_v57, %v2537_v58 }
 0xb3b   :  { %v1228_v62 = vpop.permute.xlu1 %1227 }
 0xb3c   :  { %2433 = vmatprep.subr.msk.bf16.mxu1 %vm2745_vm2, %v2431_v5 }
 0xb3d   :  { %2436 = vmatpush3.bf16.xpose.msk.msra.mxu1 %vm2745_vm2, %v2431_v5 }
 0xb3e   :  { %2443 = vmatprep.subr.msk.bf16.mxu1 %vm2745_vm2, %v2441_v61 }
 0xb3f   :  { %v1230_v63 = vpop.permute.xlu1 %1229 }
 0xb44   :  { %2273 = vmatmul.mubr.msk.f32.vlgmr.msra.gmra.mrb[8].mxu1 %vm145_vm1, %v1022_v52 }
 0xb45   :  { %2446 = vmatpush3.bf16.xpose.msk.msra.mxu1 %vm2745_vm2, %v2441_v61  ;;  %2286 = vmatprep.mubr.msk.f32.mxu1 %vm145_vm1, %v1228_v62 }
 0xb4c   :  { %2287 = vmatmul.mubr.msk.f32.vlgmr.msra.gmra.mrb[10].mxu1 %vm145_vm1, %v1230_v63 }
 0xc17   :  { %v2274_v0 = vpop.f32.mrb[8].mxu1 }
 0xc18   :  { %v1115_v1 = vmul.f32 0.25, %v2274_v0  ;;  %v1105_v2 = vpop.f32.mrb[9].mxu1 }
 0xc19   :  { %v1114_v3 = vmul.f32 0.25, %v1105_v2  ;;  %v2051_v2 = vld [vmem:[%s3100_s4 + $0x28] sm:$0xff] }
 0xc1a   :  { %v1117_v4 = vadd.f32 %v1115_v1, %v2763_v26  ;;  %v2050_v1 = vld [vmem:[%s3100_s4 + $0x20] sm:$0xff] }
 0xc1b   :  { %v1116_v6 = vadd.f32 %v1114_v3, %v2768_v29  ;;  %v2451_v3 = vpack.c.bf16 %v2051_v2, %v2050_v1  ;;  %v2067_v1 = vld [vmem:[%s3103_s7 + $0x58] sm:$0xff] }
 0xc1c   :  { %v1121_v8 = vsel %vm145_vm1, %v1117_v4, -inf }
 0xc1d   :  { %1122 = vmax.xlane.f32.xlu1 %v1121_v8  ;;  %v1118_v11 = vsel %vm145_vm1, %v1116_v6, -inf }
 0xc1e   :  { %1119 = vmax.xlane.f32.xlu0 %v1118_v11 }
 0xc1f   :  { %v2288_v17 = vpop.f32.mrb[10].mxu1 }
 0xc20   :  { %v1309_v12 = vpop.f32.mrb[11].mxu1  ;;  %v1319_v14 = vmul.f32 0.25, %v2288_v17 }
 0xc21   :  { %v1318_v13 = vmul.f32 0.25, %v1309_v12 }
 0xc22   :  { %v1321_v18 = vadd.f32 %v1319_v14, %v2763_v26 }
 0xc23   :  { %v1320_v15 = vadd.f32 %v1318_v13, %v2768_v29 }
 0xc24   :  { %v1325_v20 = vsel %vm145_vm1, %v1321_v18, -inf }
 0xc25   :  { %v1322_v16 = vsel %vm145_vm1, %v1320_v15, -inf }
 0xc26   :  { %1323 = vmax.xlane.f32.xlu0 %v1322_v16 }
 0xc2a   :  { %1326 = vmax.xlane.f32.xlu0 %v1325_v20  ;;  %v2976_v20 = vld [vmem:[%s3104_s8 + $0x8] sm:$0x3f] }
 0xcaa   :  { %v1123_v21 = vpop.xlane.xlu1 %1122 }
 0xcab   :  { %v1125_v19 = vsub.f32 %v1117_v4, %v1123_v21  ;;  %v1120_v22 = vpop.xlane.xlu0 %1119  ;;  %v2052_v4 = vld [vmem:[%s3100_s4 + $0x30] sm:$0xff]  ;;  %v1451_v21 = vrot.slane %v2976_v20, %v563_v40 }
 0xcac   :  { %v1124_v23 = vsub.f32 %v1116_v6, %v1120_v22  ;;  %v2053_v6 = vld [vmem:[%s3100_s4 + $0x38] sm:$0xff] }
 0xcad   :  { %v1128_v24 = vmul.f32 1.442695, %v1125_v19  ;;  %v2455_v8 = vpack.c.bf16 %v2053_v6, %v2052_v4  ;;  %v2069_v4 = vld [vmem:[%s3103_s7 + $0x68] sm:$0xff] }
 0xcae   :  { %v1126_v25 = vmul.f32 1.442695, %v1124_v23 }
 0xcaf   :  { %2577 = vpow2.f32 %v1128_v24 }
 0xcb0   :  { %2579 = vpow2.f32 %v1126_v25 }
 0xcb3   :  { %v1324_v27 = vpop.xlane.xlu0 %1323 }
 0xcb4   :  { %v1328_v28 = vsub.f32 %v1320_v15, %v1324_v27 }
 0xcb6   :  { %v1330_v30 = vmul.f32 1.442695, %v1328_v28 }
 0xcb7   :  { %v1327_v29 = vpop.xlane.xlu0 %1326 }
 0xcb8   :  { %2581 = vpow2.f32 %v1330_v30  ;;  %v1329_v31 = vsub.f32 %v1321_v18, %v1327_v29 }
 0xcb9   :  { %v2578_v32 = vpop.eup %2577 }
 0xcba   :  { %v2580_v26 = vpop.eup %2579  ;;  %v1332_v33 = vmul.f32 1.442695, %v1329_v31  ;;  %v1133_v34 = vsel %vm145_vm1, %v2578_v32, 0.0 }
 0xcbb   :  { %1134 = vadd.xlane.f32.xlu0 %v1133_v34  ;;  %v1130_v37 = vsel %vm145_vm1, %v2580_v26, 0.0 }
 0xcbc   :  { %2583 = vpow2.f32 %v1332_v33  ;;  %1131 = vadd.xlane.f32.xlu1 %v1130_v37 }
 0xcc2   :  { %v2582_v38 = vpop.eup %2581 }
 0xcc3   :  { %v1334_v42 = vsel %vm145_vm1, %v2582_v38, 0.0 }
 0xcc4   :  { %1335 = vadd.xlane.f32.xlu1 %v1334_v42  ;;  %v2057_v42 = vld [vmem:[%s3101_s5 + $0x28] sm:$0xff] }
 0xcc6   :  { %v2584_v43 = vpop.eup %2583 }
 0xcc7   :  { %v1337_v44 = vsel %vm145_vm1, %v2584_v43, 0.0 }
 0xcc8   :  { %1338 = vadd.xlane.f32.xlu0 %v1337_v44  ;;  %v2058_v44 = vld [vmem:[%s3101_s5 + $0x30] sm:$0xff] }
 0xcd5   :  { %2540 = vrot.lane.b32.xlu1 %v2916_v54, %s2632_s1 }
 0xcde   :  { %2545 = vrot.lane.b32.xlu0 %v2916_v54, %s2633_s23 }
 0xd48   :  { %v1135_v46 = vpop.xlane.xlu0 %1134 }
 0xd49   :  { %v1132_v45 = vpop.xlane.xlu1 %1131 }
 0xd4a   :  { %2585 = vrcp.f32 %v1132_v45  ;;  %v2059_v45 = vld [vmem:[%s3101_s5 + $0x38] sm:$0xff] }
 0xd4b   :  { %2587 = vrcp.f32 %v1135_v46  ;;  %v2463_v46 = vpack.c.bf16 %v2059_v45, %v2058_v44 }
 0xd51   :  { %v1336_v47 = vpop.xlane.xlu1 %1335 }
 0xd52   :  { %2589 = vrcp.f32 %v1336_v47 }
 0xd54   :  { %v2586_v50 = vpop.eup %2585 }
 0xd55   :  { %v2541_v51 = vpop.permute.xlu1 %2540  ;;  %v1339_v52 = vpop.xlane.xlu0 %1338  ;;  %v1138_v53 = vmul.f32 %v2586_v50, %v2580_v26 }
 0xd56   :  { %v2543_v41 = vunpack.i.h.bf16 %v2541_v51  ;;  %v2542_v55 = vunpack.i.l.bf16 %v2541_v51  ;;  %2591 = vrcp.f32 %v1339_v52  ;;  %v2588_v57 = vpop.eup %2587 }
 0xd57   :  { %2279 = vmatprep.mubr.msk.f32.mxu0 %vm145_vm1, %v1138_v53  ;;  %v1139_v5 = vmul.f32 %v2588_v57, %v2578_v32 }
 0xd58   :  { %v2437_v56 = vpack.c.bf16 %v2543_v41, %v2542_v55  ;;  %v1564_v55 = vrot.slane %v2976_v20, %v677_v9  ;;  %v2064_v9 = vld [vmem:[%s3103_s7 + $0x40] sm:$0xff] }
 0xd59   :  { %v2546_v58 = vpop.permute.xlu0 %2545 }
 0xd5a   :  { %v2548_v59 = vunpack.i.h.bf16 %v2546_v58  ;;  %v2547_v54 = vunpack.i.l.bf16 %v2546_v58  ;;  %2438 = vmatprep.subr.bf16.mxu0 %v2437_v56  ;;  %v1570_v58 = vrot.slane %v2976_v20, %v683_v10  ;;  %v2066_v10 = vld [vmem:[%s3103_s7 + $0x50] sm:$0xff] }
 0xd5b   :  { %2440 = vmatpush3.bf16.msra.mxu0 %v2437_v56  ;;  %v2471_v2 = vpack.c.bf16 %v2067_v1, %v2066_v10 }
 0xd5c   :  { %v2590_v7 = vpop.eup %2589  ;;  %v2447_v61 = vpack.c.bf16 %v2548_v59, %v2547_v54 }
 0xd5d   :  { %v1342_v62 = vmul.f32 %v2590_v7, %v2582_v38 }
 0xd5e   :  { %2280 = vmatmul.mubr.msk.f32.vlgmr.msra.gmra.mrb[10].mxu0 %vm145_vm1, %v1139_v5  ;;  %2448 = vmatprep.subr.bf16.mxu0 %v2447_v61 }
 0xd5f   :  { %2450 = vmatpush3.bf16.msra.mxu0 %v2447_v61  ;;  %2293 = vmatprep.mubr.msk.f32.mxu0 %vm145_vm1, %v1342_v62 }
 0xd60   :  { %v2592_v63 = vpop.eup %2591  ;;  %2452 = vmatprep.subr.bf16.mxu0 %v2451_v3 }
 0xd61   :  { %v1343_v0 = vmul.f32 %v2592_v63, %v2584_v43  ;;  %v2065_v63 = vld [vmem:[%s3103_s7 + $0x48] sm:$0xff] }
 0xd63   :  { %2294 = vmatmul.mubr.msk.f32.vlgmr.msra.gmra.mrb[12].mxu0 %vm145_vm1, %v1343_v0  ;;  %v2467_v0 = vpack.c.bf16 %v2065_v63, %v2064_v9 }
 0xd64   :  { %2454 = vmatpush3.bf16.msra.mxu0 %v2451_v3  ;;  %v2068_v3 = vld [vmem:[%s3103_s7 + $0x60] sm:$0xff] }
 0xd65   :  { %2456 = vmatprep.subr.bf16.mxu0 %v2455_v8  ;;  %v2475_v6 = vpack.c.bf16 %v2069_v4, %v2068_v3  ;;  %v1816_v3 = vrot.slane %v2976_v20, %v927_v36  ;;  %v1906_v36 = vld [vmem:[%s3106_s10 + $0x10] sm:$0xff] }
 0xd68   :  { %2458 = vmatpush3.bf16.msra.mxu0 %v2455_v8  ;;  %v2070_v8 = vld [vmem:[%s3103_s7 + $0x70] sm:$0xff] }
 0xd69   :  { %2468 = vmatprep.subr.bf16.mxu0 %v2467_v0 }
 0xe31   :  { %v2281_v11 = vpop.f32.mrb[10].mxu0 }
 0xe32   :  { %v1218_v17 = vpop.f32.mrb[11].mxu0 }
 0xe36   :  { %v2295_v12 = vpop.f32.mrb[12].mxu0 }
 0xe37   :  { %v1422_v14 = vpop.f32.mrb[13].mxu0 }
 0xe38   :  { %1433 = vrot.lane.b32.xlu1 %v1422_v14, %s2634_s14 }
 0xe3c   :  { %1435 = vrot.lane.b32.xlu1 %v2295_v12, %s2634_s14  ;;  %v2061_v12 = vld [vmem:[%s3102_s6 + $0x1] ss:$0 sm:$0xff] }
 0xeaa   :  { %v1434_v13 = vpop.permute.xlu1 %1433 }
 0xeab   :  { %v1439_v15 = vsel %vm145_vm1, %v1218_v17, %v1434_v13 }
 0xeac   :  { %2304 = vmatprep.mubr.msk.f32.mxu0 %vm57_vm0, %v1439_v15 }
 0xeae   :  { %v1436_v16 = vpop.permute.xlu1 %1435 }
 0xeaf   :  { %v1440_v18 = vsel %vm145_vm1, %v2281_v11, %v1436_v16  ;;  %v2071_v11 = vld [vmem:[%s3103_s7 + $0x78] sm:$0xff] }
 0xeb0   :  { %2305 = vmatmul.mubr.msk.f32.vlgmr.msra.gmra.mrb[14].mxu0 %vm57_vm0, %v1440_v18  ;;  %v2479_v17 = vpack.c.bf16 %v2071_v11, %v2070_v8 }
 0xeb1   :  { %2470 = vmatpush3.bf16.msra.mxu0 %v2467_v0  ;;  %v1810_v0 = vrot.slane %v2976_v20, %v921_v35  ;;  %v1905_v35 = vld [vmem:[%s3106_s10 + $0x8] sm:$0xff] }
 0xeb2   :  { %2472 = vmatprep.subr.bf16.mxu0 %v2471_v2 }
 0xeb5   :  { %2474 = vmatpush3.bf16.msra.mxu0 %v2471_v2 }
 0xeb6   :  { %2476 = vmatprep.subr.bf16.mxu0 %v2475_v6 }
 0xeb9   :  { %2478 = vmatpush3.bf16.msra.mxu0 %v2475_v6 }
 0xeba   :  { %2480 = vmatprep.subr.bf16.mxu0 %v2479_v17 }
 0xebd   :  { %2482 = vmatpush3.bf16.msra.mxu0 %v2479_v17 }
 0xf83   :  { %v2306_v19 = vpop.f32.mrb[14].mxu0 }
 0xf84   :  { %v1530_v22 = vadd.f32 %v2306_v19, %v1451_v21  ;;  %v1524_v23 = vpop.f32.mrb[15].mxu0 }
 0xf85   :  { %v1525_v24 = vadd.f32 %v1524_v23, %v1451_v21 }
 0xf86   :  { %v1534_v25 = vadd.f32 %v1530_v22, %v2906_v49 }
 0xf87   :  { %v1533_v27 = vadd.f32 %v1525_v24, %v2904_v48  ;;  %v2056_v48 = vld [vmem:[%s3101_s5 + $0x20] sm:$0xff] }
 0xf88   :  { %v1538_v28 = vsel %vm57_vm0, %v1534_v25, 0.0  ;;  %v2459_v43 = vpack.c.bf16 %v2057_v42, %v2056_v48 }
 0xf89   :  { %1539 = vadd.xlane.f32.xlu1 %v1538_v28  ;;  %v1535_v30 = vsel %vm57_vm0, %v1533_v27, 0.0 }
 0xf8a   :  { %1536 = vadd.xlane.f32.xlu0 %v1535_v30  ;;  %2460 = vmatprep.subr.bf16.mxu1 %v2459_v43 }
 0xf8b   :  { %2462 = vmatpush3.bf16.msra.mxu1 %v2459_v43 }
 0xf8c   :  { %2464 = vmatprep.subr.bf16.mxu1 %v2463_v46 }
 0xf8f   :  { %2466 = vmatpush3.bf16.msra.mxu1 %v2463_v46 }
0x1016   :  { %v1540_v29 = vpop.xlane.xlu1 %1539 }
0x1017   :  { %v1542_v31 = vmul.f32 0.03125, %v1540_v29  ;;  %v1537_v32 = vpop.xlane.xlu0 %1536 }
0x1018   :  { %v1541_v26 = vmul.f32 0.03125, %v1537_v32 }
0x1019   :  { %v1544_v33 = vsub.f32 %v1534_v25, %v1542_v31 }
0x101a   :  { %v1543_v40 = vsub.f32 %v1533_v27, %v1541_v26 }
0x101b   :  { %v1546_v38 = vmul.f32 %v1544_v33, %v1544_v33 }
0x101c   :  { %v1545_v34 = vmul.f32 %v1543_v40, %v1543_v40 }
0x101d   :  { %v1550_v49 = vsel %vm57_vm0, %v1546_v38, 0.0  ;;  %v1697_v38 = vrot.slane %v2976_v20, %v807_v60  ;;  %v2487_v20 = vpack.c.bf16 %v1905_v35, %v1904_v39 }
0x101e   :  { %v1547_v37 = vsel %vm57_vm0, %v1545_v34, 0.0 }
0x101f   :  { %1548 = vadd.xlane.f32.xlu0 %v1547_v37 }
0x1023   :  { %1551 = vadd.xlane.f32.xlu0 %v1550_v49 }
0x10ac   :  { %v1549_v47 = vpop.xlane.xlu0 %1548 }
0x10ad   :  { %v1553_v50 = vmul.f32 0.03125, %v1549_v47 }
0x10af   :  { %v1555_v51 = vadd.f32 1e-12, %v1553_v50 }
0x10b0   :  { %v1552_v52 = vpop.xlane.xlu0 %1551 }
0x10b1   :  { %2593 = vrsqrt.f32 %v1555_v51  ;;  %v1554_v53 = vmul.f32 0.03125, %v1552_v52 }
0x10b3   :  { %v1556_v41 = vadd.f32 1e-12, %v1554_v53 }
0x10b5   :  { %2595 = vrsqrt.f32 %v1556_v41 }
0x10bb   :  { %v2594_v56 = vpop.eup %2593 }
0x10bc   :  { %v1559_v57 = vmul.f32 %v2594_v56, %v1543_v40 }
0x10be   :  { %v1565_v59 = vmul.f32 %v1564_v55, %v1559_v57 }
0x10bf   :  { %v2596_v54 = vpop.eup %2595 }
0x10c0   :  { %v1560_v7 = vmul.f32 %v2596_v54, %v1544_v33  ;;  %v1571_v5 = vadd.f32 %v1570_v58, %v1565_v59  ;;  %v2635_v59 = vmov 0.0|0.0   ;;  %v2637_v54 = vmov 0.0  }
0x10c1   :  { %2483 = vmatprep.subr.bf16.mxu1 %v2635_v59 }
0x10c2   :  { %v1566_v61 = vmul.f32 %v1564_v55, %v1560_v7  ;;  %2315 = vmatprep.mubr.msk.f32.mxu1 %vm57_vm0, %v1571_v5 }
0x10c4   :  { %v1572_v62 = vadd.f32 %v1570_v58, %v1566_v61 }
0x10c6   :  { %2316 = vmatmul.mubr.msk.f32.vlgmr.msra.gmra.mrb[12].mxu1 %vm57_vm0, %v1572_v62 }
0x10c7   :  { %2341 = vmatprep.mubr.msk.f32.mxu1 %vm2636_vm4, %v2637_v54 }
0x1199   :  { %v2317_v14 = vpop.f32.mrb[12].mxu1 }
0x119a   :  { %v1664_v13 = vadd.f32 %v2317_v14, %v2061_v12  ;;  %v1658_v15 = vpop.f32.mrb[13].mxu1  ;;  %v1819_v14 = vld [vmem:[%s3105_s9] sm:$0xf] }
0x119b   :  { %v1659_v16 = vadd.f32 %v2061_v12, %v1658_v15 }
0x119c   :  { %v1668_v18 = vmul.f32 %v1664_v13, %v1664_v13 }
0x119d   :  { %v1667_v21 = vmul.f32 %v1659_v16, %v1659_v16 }
0x119e   :  { %v1670_v19 = vmul.f32 %v1668_v18, %v1664_v13  ;;  %v1909_v18 = vld [vmem:[%s3106_s10 + $0x28] sm:$0xff] }
0x119f   :  { %v1669_v22 = vmul.f32 %v1667_v21, %v1659_v16 }
0x11a0   :  { %v1672_v23 = vmul.f32 0.044715, %v1670_v19  ;;  %v1910_v19 = vld [vmem:[%s3106_s10 + $0x30] sm:$0xff] }
0x11a1   :  { %v1671_v24 = vmul.f32 0.044715, %v1669_v22  ;;  %v1911_v22 = vld [vmem:[%s3106_s10 + $0x38] sm:$0xff] }
0x11a2   :  { %v1674_v25 = vadd.f32 %v1672_v23, %v1664_v13  ;;  %v2496_v23 = vpack.c.bf16 %v1911_v22, %v1910_v19 }
0x11a3   :  { %v1673_v27 = vadd.f32 %v1671_v24, %v1659_v16 }
0x11a4   :  { %v1676_v28 = vmul.f32 0.7978846, %v1674_v25 }
0x11a5   :  { %v1675_v30 = vmul.f32 0.7978846, %v1673_v27 }
0x11a6   :  { %2597 = vtanh.f32 %v1676_v28 }
0x11a7   :  { %2599 = vtanh.f32 %v1675_v30 }
0x11b0   :  { %v2598_v29 = vpop.eup %2597 }
0x11b1   :  { %v2600_v31 = vpop.eup %2599  ;;  %v1680_v32 = vadd.f32 1.0, %v2598_v29 }
0x11b2   :  { %v1679_v26 = vadd.f32 1.0, %v2600_v31 }
0x11b3   :  { %v1682_v33 = vmul.f32 0.5, %v1680_v32 }
0x11b4   :  { %v1681_v40 = vmul.f32 0.5, %v1679_v26  ;;  %v2075_v26 = vld [vmem:[%s3107_s11] ss:$0 sm:$0xff] }
0x11b5   :  { %v1684_v37 = vmul.f32 %v1682_v33, %v1664_v13  ;;  %v1907_v13 = vld [vmem:[%s3106_s10 + $0x18] sm:$0xff] }
0x11b6   :  { %v1683_v34 = vmul.f32 %v1681_v40, %v1659_v16  ;;  %v2490_v15 = vpack.c.bf16 %v1907_v13, %v1906_v36  ;;  %v1908_v16 = vld [vmem:[%s3106_s10 + $0x20] sm:$0xff]  ;;  %s2639_s10 = smov [#allocation2]  }
0x11b7   :  { %v2493_v21 = vpack.c.bf16 %v1909_v18, %v1908_v16  ;;  %s1999_s1 = sshll.u32 %s2639_s10, 4  ;;  %s2000_s1 = int_to_ptr.vmem [resolvable:$true] %s1999_s1 }
0x11b8   :  { %2334 = vmatprep.mubr.msk.f32.mxu0 %vm809_vm3, %v1683_v34  ;;  %s2605_s23 = scalar_lea.vmem %s2000_s1, 32  ;;  %p2610_p1 = scmp.lt.s32.totalorder %s2000_s1, %s2000_s1 }
0x11b9   :  { %2335 = vmatmul.mubr.msk.f32.vlgmr.msra.gmra.mrb[16].mxu0 %vm809_vm3, %v1684_v37  ;;  %p2606_p0 = scmp.ne.s32.totalorder %s2000_s1, %s2605_s23  ;;  %p2611_p2 = scmp.lt.s32.totalorder %s2605_s23, %s2605_s23 }
0x11bb   :  { %p2612_p3 = por %p2611_p2, %p2610_p1 }
0x11bd   :  { %p2613_p4 = pnand %p2612_p3, %p2606_p0 }
0x128c   :  { %v2336_v49 = vpop.f32.mrb[16].mxu0 }
0x128d   :  { %v1776_v48 = vadd.f32 %v2336_v49, %v1697_v38  ;;  %v1770_v42 = vpop.f32.mrb[17].mxu0 }
0x128e   :  { %v1771_v43 = vadd.f32 %v1770_v42, %v1697_v38 }
0x128f   :  { %v1780_v44 = vadd.f32 %v1776_v48, %v1572_v62 }
0x1290   :  { %v1779_v45 = vadd.f32 %v1771_v43, %v1571_v5 }
0x1291   :  { %v1784_v46 = vsel %vm57_vm0, %v1780_v44, 0.0 }
0x1292   :  { %1785 = vadd.xlane.f32.xlu0 %v1784_v46  ;;  %v1781_v47 = vsel %vm57_vm0, %v1779_v45, 0.0 }
0x1293   :  { %1782 = vadd.xlane.f32.xlu1 %v1781_v47 }
0x131f   :  { %v1786_v50 = vpop.xlane.xlu0 %1785 }
0x1320   :  { %v1788_v51 = vmul.f32 0.03125, %v1786_v50  ;;  %v1783_v52 = vpop.xlane.xlu1 %1782 }
0x1321   :  { %v1787_v53 = vmul.f32 0.03125, %v1783_v52 }
0x1322   :  { %v1790_v41 = vsub.f32 %v1780_v44, %v1788_v51 }
0x1323   :  { %v1789_v55 = vsub.f32 %v1779_v45, %v1787_v53 }
0x1324   :  { %v1792_v56 = vmul.f32 %v1790_v41, %v1790_v41 }
0x1325   :  { %v1791_v60 = vmul.f32 %v1789_v55, %v1789_v55 }
0x1326   :  { %v1796_v57 = vsel %vm57_vm0, %v1792_v56, 0.0 }
0x1327   :  { %1797 = vadd.xlane.f32.xlu0 %v1796_v57  ;;  %v1793_v58 = vsel %vm57_vm0, %v1791_v60, 0.0 }
0x1328   :  { %1794 = vadd.xlane.f32.xlu1 %v1793_v58 }
0x13b4   :  { %v1798_v7 = vpop.xlane.xlu0 %1797 }
0x13b5   :  { %v1800_v5 = vmul.f32 0.03125, %v1798_v7  ;;  %v1795_v61 = vpop.xlane.xlu1 %1794 }
0x13b6   :  { %v1799_v62 = vmul.f32 0.03125, %v1795_v61 }
0x13b7   :  { %v1802_v9 = vadd.f32 1e-12, %v1800_v5 }
0x13b8   :  { %v1801_v63 = vadd.f32 1e-12, %v1799_v62 }
0x13b9   :  { %2601 = vrsqrt.f32 %v1802_v9 }
0x13ba   :  { %2603 = vrsqrt.f32 %v1801_v63 }
0x13c3   :  { %v2602_v10 = vpop.eup %2601 }
0x13c4   :  { %v2604_v1 = vpop.eup %2603  ;;  %v1806_v2 = vmul.f32 %v2602_v10, %v1790_v41 }
0x13c5   :  { %v1805_v4 = vmul.f32 %v2604_v1, %v1789_v55 }
0x13c6   :  { %v1812_v6 = vmul.f32 %v1810_v0, %v1806_v2 }
0x13c7   :  { %v1811_v8 = vmul.f32 %v1810_v0, %v1805_v4 }
0x13c8   :  { %v1818_v11 = vadd.f32 %v1816_v3, %v1812_v6 }
0x13c9   :  { %v1817_v17 = vadd.f32 %v1816_v3, %v1811_v8 }
0x13cb   :  { %v2484_v12 = vpack.c.bf16 %v1818_v11, %v1817_v17 }
0x13cd   :  { %2485 = vmatpush3.bf16.msra.mxu1 %v2484_v12 }
0x13ce   :  { %2486 = vmatprep.subr.bf16.mxu1 %v2635_v59 }
0x13d0   :  { %2342 = vmatmul.mubr.msk.f32.vlgmr.msra.gmra.mrb[14].mxu1 %vm145_vm1, %v1819_v14 }
0x13d1   :  { %2360 = vmatprep.mubr.msk.f32.mxu1 %vm2636_vm4, %v2637_v54  ;;  %2488 = vmatpush3.bf16.msra.mxu1 %v2487_v20 }
0x13d2   :  { %2489 = vmatprep.subr.bf16.mxu1 %v2635_v59 }
0x13d5   :  { %2491 = vmatpush3.bf16.msra.mxu1 %v2490_v15 }
0x13d6   :  { %2492 = vmatprep.subr.bf16.mxu1 %v2635_v59 }
0x13d9   :  { %2494 = vmatpush3.bf16.msra.mxu1 %v2493_v21 }
0x13da   :  { %2495 = vmatprep.subr.bf16.mxu1 %v2635_v59 }
0x13dd   :  { %2497 = vmatpush3.bf16.msra.mxu1 %v2496_v23 }
0x14a3   :  { %v1889_v24 = vpop.f32.mrb[14].mxu1 }
0x14a4   :  { %v1894_v25 = vrot.slane %v1889_v24, 2  ;;  %v2343_v27 = vpop.f32.mrb[15].mxu1 }
0x14a6   :  { %v1896_v28 = vsub.f32 %v1889_v24, %v1894_v25  ;;  %v1898_v30 = vmul.f32 %v1894_v25, %v1889_v24 }
0x14a8   :  { %1900 = vrot.lane.b32.xlu1 %v1898_v30, %s2638_s17  ;;  %v1897_v29 = vand.u32 2147483647, %v1896_v28 }
0x151a   :  { %v1901_v31 = vpop.permute.xlu1 %1900 }
0x151b   :  { %v1903_v32 = vsel %vm57_vm0, %v1897_v29, %v1901_v31 }
0x151c   :  { %2361 = vmatmul.mubr.msk.f32.vlgmr.msra.gmra.mrb[16].mxu1 %vm809_vm3, %v1903_v32 }
0x15ef   :  { %v1988_v33 = vpop.f32.mrb[16].mxu1 }
0x15f0   :  { %v1989_v40 = vadd.f32 %v2075_v26, %v1988_v33  ;;  %v2362_v34 = vpop.f32.mrb[17].mxu1 }
0x15f2   :  { %1992 = vst [vmem:[#allocation2] sm:$0x3] %v1989_v40 }
0x15f3   :  { %2616 = shalt.err (!%p2613_p4)
}
0x15f4   :  { %s2617_s4 = scalar_lea.hbm %s3108_s12, 32 }
0x15f5   :  { %p2618_p5 = scmp.ne.s32.totalorder %s3108_s12, %s2617_s4  ;;  %p2621_p6 = scmp.lt.u32.totalorder %s2617_s4, %s3108_s12 }
0x15f7   :  { %p2623_p7 = pnand %p2621_p6, %p2618_p5 }
0x15f9   :  { %2626 = shalt.err (!%p2623_p7)
}
0x15fa   :  { %2002 = dma.vmem_to_hbm [thread:$0]  %s2000_s1, 32, %s3108_s12, [#allocation3]  }
0x15fb   :  { %2627 = dma.done.wait [#allocation3], 32  }
0x15fc   :  { %2628 = vsyncadd [#allocation3], 4294967264 }
0x15fd   :  { %2006 = vsyncpa [#allocation3], 1 }

</bundles_post_ra>
